<compile_context>
chip_gen: v7x
topology: tpu7x:2x2x1
jax: 0.10.0
libtpu: 0.0.40
codegen_flags: <defaults>
</compile_context>

<pallas_src>
import functools

import jax
import jax.numpy as jnp
from jax.experimental import pallas as pl
from jax.experimental.pallas import tpu as pltpu

_HIGH = jax.lax.Precision.HIGHEST   # only used by the pure-JAX reference


# -----------------------------------------------------------------------------
# Fused Pallas kernel: whole FeatureCompensationNet, batch collapsed into rows.
# -----------------------------------------------------------------------------
def _fcn_kernel(x_ref, b_ref, bias_ref, o_ref, *, H, w1, w2, w3):
    """x/o: (N*H, W*C) f32;  b: (6, 3*W*C, W*C) bf16;  bias: (6, 1, W*C) f32."""
    x = x_ref[...]                                    # (NH, WC) f32
    nh, wc = x.shape

    # Per-batch-element H-boundary masks (batch is folded into the row dim),
    # hoisted out of the 6 conv calls.
    h_idx = jax.lax.broadcasted_iota(jnp.int32, (nh, 1), 0) % H
    first_row = h_idx == 0                            # h == 0   -> no h-1 tap
    last_row = h_idx == (H - 1)                       # h == H-1 -> no h+1 tap
    zrow = jnp.zeros((1, wc), jnp.float32)

    def ds_conv_bn(xin, idx):
        # depthwise3x3 + bias + pointwise1x1 + bias + folded BN.
        # h±1 taps via sublane shift + boundary mask; the W-offset taps and
        # channel mixing are folded into one banded (3*WC, WC) matrix, so the
        # whole conv is a single K=3*WC bf16 dot with f32 accumulation.
        xm = jnp.where(first_row, 0.0,
                       jnp.concatenate([zrow, xin[:-1, :]], axis=0))   # x[h-1]
        xp = jnp.where(last_row, 0.0,
                       jnp.concatenate([xin[1:, :], zrow], axis=0))    # x[h+1]
        x3 = jnp.concatenate([xm, xin, xp], axis=-1).astype(jnp.bfloat16)
        y = jnp.dot(x3, b_ref[idx], preferred_element_type=jnp.float32)
        return y + bias_ref[idx]                      # (NH, WC) + (1, WC)

    def res_block(xin, blk, w):
        h1 = jnp.maximum(ds_conv_bn(xin, 2 * blk + 0), 0.0)
        h2 = ds_conv_bn(h1, 2 * blk + 1)
        return jnp.maximum(h2 + w * xin, 0.0)

    x1 = res_block(x, 0, w1)
    x2 = res_block(x1, 1, w2)
    m = res_block(x2, 2, w3)
    o_ref[...] = jnp.maximum(x + 0.1 * m, 0.0).astype(o_ref.dtype)


# -----------------------------------------------------------------------------
# Host-side folding of conv / BN params into the fused-matmul form
# -----------------------------------------------------------------------------
def build_kernel_operands(params, H, W, C):
    """Returns b_all (6, 3*WC, WC) bf16 and bias_all (6, 1, WC) f32."""
    WC = W * C
    b_list, bias_list = [], []
    for blk in params:
        for tag in ("1", "2"):
            dw = blk["dw" + tag]                      # (3, 3, C)  dw[i, j, c]
            db = blk["db" + tag].reshape(C)
            pw = blk["pw" + tag]                      # (C, C)     pw[cin, cout]
            pb = blk["pb" + tag].reshape(C)
            s = blk["s" + tag].reshape(C)             # folded BN scale
            t = blk["t" + tag].reshape(C)             # folded BN shift
            pwf = pw * s[None, :]                     # BN scale into pointwise
            rows = []
            for r in (-1, 0, 1):                      # H-offset (kernel row r+1)
                B = jnp.zeros((WC, WC), jnp.float32)
                for so in (-1, 0, 1):                 # W-offset (kernel col so+1)
                    M = dw[r + 1, so + 1][:, None] * pwf            # (C, C)
                    B = B + jnp.kron(jnp.eye(W, k=-so, dtype=jnp.float32), M)
                rows.append(B)
            # K-fused weight: multiplies [x_{h-1} | x | x_{h+1}] in one dot.
            b_list.append(jnp.concatenate(rows, axis=0))            # (3*WC, WC)
            bias_c = db @ pwf + pb * s + t            # dw-bias, pw-bias, BN shift
            bias_list.append(jnp.tile(bias_c, W).reshape(1, WC))

    b_all = jnp.stack(b_list, axis=0).astype(jnp.bfloat16)          # (6,3WC,WC)
    bias_all = jnp.stack(bias_list, axis=0)                         # (6,1,WC)
    return b_all, bias_all


# -----------------------------------------------------------------------------
# Wrapper (accepts PyTorch-style NCHW)
# -----------------------------------------------------------------------------
def feature_compensation_net(x_nchw, params, w1=0.5, w2=0.5, w3=0.5):
    N, C, H, W = x_nchw.shape
    WC = W * C
    # Layout change done once at the API boundary; the whole net is a single
    # fused dispatch on the lane-dense, batch-collapsed (N*H, W*C) layout.
    # (At production sizes these transposes should be folded in too.)
    x = jnp.transpose(x_nchw, (0, 2, 3, 1)).reshape(N * H, WC).astype(jnp.float32)
    b_all, bias_all = build_kernel_operands(params, H, W, C)

    out = pl.pallas_call(
        functools.partial(_fcn_kernel, H=H, w1=w1, w2=w2, w3=w3),
        out_shape=jax.ShapeDtypeStruct((N * H, WC), jnp.float32),
        grid=(1,),
        in_specs=[
            pl.BlockSpec((N * H, WC), lambda i: (0, 0)),
            pl.BlockSpec((6, 3 * WC, WC), lambda i: (0, 0, 0)),
            pl.BlockSpec((6, 1, WC), lambda i: (0, 0, 0)),
        ],
        out_specs=pl.BlockSpec((N * H, WC), lambda i: (0, 0)),
        compiler_params=pltpu.CompilerParams(
            dimension_semantics=("arbitrary",)),
    )(x, b_all, bias_all)

    return jnp.transpose(out.reshape(N, H, W, C), (0, 3, 1, 2))     # back to NCHW


# -----------------------------------------------------------------------------
# Deterministic parameter construction
# -----------------------------------------------------------------------------
def make_params(key, C):
    """Three residual blocks; all convs are C->C (required by the residual)."""
    # TODO(synk): BatchNorm2d is implemented in inference mode (running stats
    # folded into scale/shift); PyTorch training-mode batch statistics are not
    # reproduced.
    params = []
    for b in range(3):
        kb = jax.random.fold_in(key, b)
        ks = jax.random.split(kb, 16)
        blk = {}
        for i, tag in enumerate(("1", "2")):
            o = 8 * i
            blk["dw" + tag] = 0.2 * jax.random.normal(ks[o + 0], (3, 3, C), jnp.float32)
            blk["db" + tag] = 0.1 * jax.random.normal(ks[o + 1], (C,), jnp.float32)
            blk["pw" + tag] = 0.2 * jax.random.normal(ks[o + 2], (C, C), jnp.float32)
            blk["pb" + tag] = 0.1 * jax.random.normal(ks[o + 3], (C,), jnp.float32)
            gamma = 1.0 + 0.1 * jax.random.normal(ks[o + 4], (C,), jnp.float32)
            beta = 0.1 * jax.random.normal(ks[o + 5], (C,), jnp.float32)
            rmean = 0.1 * jax.random.normal(ks[o + 6], (C,), jnp.float32)
            rvar = 1.0 + 0.1 * jax.random.uniform(ks[o + 7], (C,), jnp.float32)
            scale = gamma / jnp.sqrt(rvar + 1e-5)      # folded eval-mode BN
            shift = beta - rmean * scale
            blk["s" + tag] = scale
            blk["t" + tag] = shift
        params.append(blk)
    return params


# -----------------------------------------------------------------------------
# Pure-JAX reference (direct NHWC convolutions, full f32) for correctness check
# -----------------------------------------------------------------------------
def _ref_ds_conv_bn(x, dw, db, pw, pb, s, t):
    N, H, W, C = x.shape
    xp = jnp.pad(x, ((0, 0), (1, 1), (1, 1), (0, 0)))
    acc = jnp.zeros_like(x)
    for i in range(3):
        for j in range(3):
            acc = acc + xp[:, i:i + H, j:j + W, :] * dw[i, j]
    acc = acc + db
    y = jnp.einsum("nhwc,cd->nhwd", acc, pw, precision=_HIGH) + pb
    return y * s + t


def _ref_block(x, p, w):
    h = jax.nn.relu(_ref_ds_conv_bn(x, p["dw1"], p["db1"], p["pw1"],
                                    p["pb1"], p["s1"], p["t1"]))
    h = _ref_ds_conv_bn(h, p["dw2"], p["db2"], p["pw2"],
                        p["pb2"], p["s2"], p["t2"])
    return jax.nn.relu(h + w * x)


def _ref_net(x_nchw, params):
    x = jnp.transpose(x_nchw, (0, 2, 3, 1))
    x1 = _ref_block(x, params[0], 0.5)
    x2 = _ref_block(x1, params[1], 0.5)
    m = _ref_block(x2, params[2], 0.5)
    out = jax.nn.relu(x + 0.1 * m)
    return jnp.transpose(out, (0, 3, 1, 2))


# -----------------------------------------------------------------------------
if __name__ == "__main__":
    # C=8, W=16 -> W*C = 128 lanes (one full vreg row); N*H = 32 MXU rows.
    N, C, H, W = 2, 8, 16, 16
    key = jax.random.PRNGKey(0)
    kx, kp = jax.random.split(key)
    x = jax.random.normal(kx, (N, C, H, W), jnp.float32)
    params = make_params(kp, C)

    out = jax.block_until_ready(feature_compensation_net(x, params))
    ref = jax.block_until_ready(_ref_net(x, params))

    if out.shape != (N, C, H, W):
        raise AssertionError(f"bad output shape {out.shape}")
    # bf16 matmul operands (per perf review) vs full-f32 reference -> slightly
    # looser tolerance than the pure-f32 version.
    if not jnp.allclose(out, ref, atol=5e-3, rtol=5e-3):
        err = float(jnp.max(jnp.abs(out - ref)))
        raise AssertionError(f"Pallas kernel mismatch vs JAX reference, max err={err}")

    print("KERNEL_OK")
</pallas_src>

<mosaic_0001>
module attributes {stable_mosaic.version = 11 : i64} {
  func.func @_fcn_kernel(%arg0: i32, %arg1: memref<32x128xf32, #tpu.memory_space<vmem>>, %arg2: memref<6x384x128xbf16, #tpu.memory_space<vmem>>, %arg3: memref<6x1x128xf32, #tpu.memory_space<vmem>>, %arg4: memref<32x128xf32, #tpu.memory_space<vmem>>) attributes {dimension_semantics = [#tpu.dimension_semantics<arbitrary>], iteration_bounds = array<i64: 1>, scalar_prefetch = 0 : i64, scratch_operands = 0 : i64, tpu.core_type = #tpu.core_type<tc>, window_params = [{pipeline_mode = #tpu.pipeline_mode<synchronous>, transform_indices = @transform_0, window_bounds = array<i64: 32, 128>}, {pipeline_mode = #tpu.pipeline_mode<synchronous>, transform_indices = @transform_1, window_bounds = array<i64: 6, 384, 128>}, {pipeline_mode = #tpu.pipeline_mode<synchronous>, transform_indices = @transform_2, window_bounds = array<i64: 6, 1, 128>}, {pipeline_mode = #tpu.pipeline_mode<synchronous>, transform_indices = @transform_3, window_bounds = array<i64: 32, 128>}]} {
    %c0 = arith.constant 0 : index
    %c0_0 = arith.constant 0 : index
    %0 = vector.load %arg1[%c0, %c0_0] : memref<32x128xf32, #tpu.memory_space<vmem>>, vector<32x128xf32>
    %1 = tpu.iota {dimensions = array<i32: 0>} : vector<32x1xi32>
    %c16_i32 = arith.constant 16 : i32
    %c0_i32 = arith.constant 0 : i32
    %2 = arith.cmpi eq, %c16_i32, %c0_i32 : i32
    %c1_i32 = arith.constant 1 : i32
    %3 = arith.select %2, %c1_i32, %c16_i32 : i32
    %4 = vector.broadcast %3 : i32 to vector<32x1xi32>
    %5 = arith.remsi %1, %4 : vector<32x1xi32>
    %c0_i32_1 = arith.constant 0 : i32
    %6 = vector.broadcast %c0_i32_1 : i32 to vector<32x1xi32>
    %7 = arith.cmpi ne, %5, %6 : vector<32x1xi32>
    %c0_i32_2 = arith.constant 0 : i32
    %8 = vector.broadcast %c0_i32_2 : i32 to vector<32x1xi32>
    %9 = arith.cmpi slt, %5, %8 : vector<32x1xi32>
    %c0_i32_3 = arith.constant 0 : i32
    %10 = arith.cmpi slt, %3, %c0_i32_3 : i32
    %11 = vector.broadcast %10 : i1 to vector<32x1xi1>
    %12 = vector.broadcast %11 : vector<32x1xi1> to vector<32x1xi1>
    %13 = arith.xori %9, %12 : vector<32x1xi1>
    %14 = arith.andi %13, %7 : vector<32x1xi1>
    %15 = vector.broadcast %3 : i32 to vector<32x1xi32>
    %16 = arith.addi %5, %15 : vector<32x1xi32>
    %17 = arith.select %14, %16, %5 : vector<32x1xi1>, vector<32x1xi32>
    %c0_i32_4 = arith.constant 0 : i32
    %18 = vector.broadcast %c0_i32_4 : i32 to vector<32x1xi32>
    %19 = arith.cmpi eq, %17, %18 : vector<32x1xi32>
    %c15_i32 = arith.constant 15 : i32
    %20 = vector.broadcast %c15_i32 : i32 to vector<32x1xi32>
    %21 = arith.cmpi eq, %17, %20 : vector<32x1xi32>
    %cst = arith.constant 0.000000e+00 : f32
    %22 = vector.broadcast %cst : f32 to vector<1x128xf32>
    %23 = vector.extract_strided_slice %0 {offsets = [0, 0], sizes = [31, 128], strides = [1, 1]} : vector<32x128xf32> to vector<31x128xf32>
    %24 = tpu.concatenate %22, %23 in 0 : vector<1x128xf32>, vector<31x128xf32> -> vector<32x128xf32>
    %cst_5 = arith.constant 0.000000e+00 : f32
    %25 = vector.shape_cast %19 : vector<32x1xi1> to vector<32x1xi1>
    %26 = vector.broadcast %25 : vector<32x1xi1> to vector<32x128xi1>
    %27 = vector.broadcast %cst_5 : f32 to vector<32x128xf32>
    %28 = arith.select %26, %27, %24 : vector<32x128xi1>, vector<32x128xf32>
    %29 = vector.extract_strided_slice %0 {offsets = [1, 0], sizes = [31, 128], strides = [1, 1]} : vector<32x128xf32> to vector<31x128xf32>
    %30 = tpu.concatenate %29, %22 in 0 : vector<31x128xf32>, vector<1x128xf32> -> vector<32x128xf32>
    %cst_6 = arith.constant 0.000000e+00 : f32
    %31 = vector.shape_cast %21 : vector<32x1xi1> to vector<32x1xi1>
    %32 = vector.broadcast %31 : vector<32x1xi1> to vector<32x128xi1>
    %33 = vector.broadcast %cst_6 : f32 to vector<32x128xf32>
    %34 = arith.select %32, %33, %30 : vector<32x128xi1>, vector<32x128xf32>
    %35 = tpu.concatenate %28, %0, %34 in 1 : vector<32x128xf32>, vector<32x128xf32>, vector<32x128xf32> -> vector<32x384xf32>
    %36 = arith.truncf %35 : vector<32x384xf32> to vector<32x384xbf16>
    %c0_7 = arith.constant 0 : index
    %c0_8 = arith.constant 0 : index
    %c0_9 = arith.constant 0 : index
    %37 = vector.load %arg2[%c0_7, %c0_8, %c0_9] : memref<6x384x128xbf16, #tpu.memory_space<vmem>>, vector<1x384x128xbf16>
    %38 = vector.shape_cast %37 : vector<1x384x128xbf16> to vector<384x128xbf16>
    %cst_10 = arith.constant dense<0.000000e+00> : vector<32x128xf32>
    %39 = tpu.matmul %36, %38, %cst_10 {dimension_numbers = #tpu.dot_dimension_numbers<[1], [0], [0], [1], [0, 0, 1, 1], [], []>} : vector<32x384xbf16>, vector<384x128xbf16>, vector<32x128xf32> -> vector<32x128xf32>
    %c0_11 = arith.constant 0 : index
    %c0_12 = arith.constant 0 : index
    %c0_13 = arith.constant 0 : index
    %40 = vector.load %arg3[%c0_11, %c0_12, %c0_13] : memref<6x1x128xf32, #tpu.memory_space<vmem>>, vector<1x1x128xf32>
    %41 = vector.shape_cast %40 : vector<1x1x128xf32> to vector<1x128xf32>
    %42 = vector.broadcast %41 : vector<1x128xf32> to vector<32x128xf32>
    %43 = arith.addf %39, %42 : vector<32x128xf32>
    %cst_14 = arith.constant 0.000000e+00 : f32
    %44 = vector.broadcast %cst_14 : f32 to vector<32x128xf32>
    %45 = arith.maximumf %43, %44 : vector<32x128xf32>
    %46 = vector.extract_strided_slice %45 {offsets = [0, 0], sizes = [31, 128], strides = [1, 1]} : vector<32x128xf32> to vector<31x128xf32>
    %47 = tpu.concatenate %22, %46 in 0 : vector<1x128xf32>, vector<31x128xf32> -> vector<32x128xf32>
    %cst_15 = arith.constant 0.000000e+00 : f32
    %48 = vector.shape_cast %19 : vector<32x1xi1> to vector<32x1xi1>
    %49 = vector.broadcast %48 : vector<32x1xi1> to vector<32x128xi1>
    %50 = vector.broadcast %cst_15 : f32 to vector<32x128xf32>
    %51 = arith.select %49, %50, %47 : vector<32x128xi1>, vector<32x128xf32>
    %52 = vector.extract_strided_slice %45 {offsets = [1, 0], sizes = [31, 128], strides = [1, 1]} : vector<32x128xf32> to vector<31x128xf32>
    %53 = tpu.concatenate %52, %22 in 0 : vector<31x128xf32>, vector<1x128xf32> -> vector<32x128xf32>
    %cst_16 = arith.constant 0.000000e+00 : f32
    %54 = vector.shape_cast %21 : vector<32x1xi1> to vector<32x1xi1>
    %55 = vector.broadcast %54 : vector<32x1xi1> to vector<32x128xi1>
    %56 = vector.broadcast %cst_16 : f32 to vector<32x128xf32>
    %57 = arith.select %55, %56, %53 : vector<32x128xi1>, vector<32x128xf32>
    %58 = tpu.concatenate %51, %45, %57 in 1 : vector<32x128xf32>, vector<32x128xf32>, vector<32x128xf32> -> vector<32x384xf32>
    %59 = arith.truncf %58 : vector<32x384xf32> to vector<32x384xbf16>
    %c1 = arith.constant 1 : index
    %c0_17 = arith.constant 0 : index
    %c0_18 = arith.constant 0 : index
    %60 = vector.load %arg2[%c1, %c0_17, %c0_18] : memref<6x384x128xbf16, #tpu.memory_space<vmem>>, vector<1x384x128xbf16>
    %61 = vector.shape_cast %60 : vector<1x384x128xbf16> to vector<384x128xbf16>
    %cst_19 = arith.constant dense<0.000000e+00> : vector<32x128xf32>
    %62 = tpu.matmul %59, %61, %cst_19 {dimension_numbers = #tpu.dot_dimension_numbers<[1], [0], [0], [1], [0, 0, 1, 1], [], []>} : vector<32x384xbf16>, vector<384x128xbf16>, vector<32x128xf32> -> vector<32x128xf32>
    %c1_20 = arith.constant 1 : index
    %c0_21 = arith.constant 0 : index
    %c0_22 = arith.constant 0 : index
    %63 = vector.load %arg3[%c1_20, %c0_21, %c0_22] : memref<6x1x128xf32, #tpu.memory_space<vmem>>, vector<1x1x128xf32>
    %64 = vector.shape_cast %63 : vector<1x1x128xf32> to vector<1x128xf32>
    %65 = vector.broadcast %64 : vector<1x128xf32> to vector<32x128xf32>
    %66 = arith.addf %62, %65 : vector<32x128xf32>
    %cst_23 = arith.constant 5.000000e-01 : f32
    %67 = vector.broadcast %cst_23 : f32 to vector<32x128xf32>
    %68 = arith.mulf %67, %0 : vector<32x128xf32>
    %69 = arith.addf %66, %68 : vector<32x128xf32>
    %cst_24 = arith.constant 0.000000e+00 : f32
    %70 = vector.broadcast %cst_24 : f32 to vector<32x128xf32>
    %71 = arith.maximumf %69, %70 : vector<32x128xf32>
    %72 = vector.extract_strided_slice %71 {offsets = [0, 0], sizes = [31, 128], strides = [1, 1]} : vector<32x128xf32> to vector<31x128xf32>
    %73 = tpu.concatenate %22, %72 in 0 : vector<1x128xf32>, vector<31x128xf32> -> vector<32x128xf32>
    %cst_25 = arith.constant 0.000000e+00 : f32
    %74 = vector.shape_cast %19 : vector<32x1xi1> to vector<32x1xi1>
    %75 = vector.broadcast %74 : vector<32x1xi1> to vector<32x128xi1>
    %76 = vector.broadcast %cst_25 : f32 to vector<32x128xf32>
    %77 = arith.select %75, %76, %73 : vector<32x128xi1>, vector<32x128xf32>
    %78 = vector.extract_strided_slice %71 {offsets = [1, 0], sizes = [31, 128], strides = [1, 1]} : vector<32x128xf32> to vector<31x128xf32>
    %79 = tpu.concatenate %78, %22 in 0 : vector<31x128xf32>, vector<1x128xf32> -> vector<32x128xf32>
    %cst_26 = arith.constant 0.000000e+00 : f32
    %80 = vector.shape_cast %21 : vector<32x1xi1> to vector<32x1xi1>
    %81 = vector.broadcast %80 : vector<32x1xi1> to vector<32x128xi1>
    %82 = vector.broadcast %cst_26 : f32 to vector<32x128xf32>
    %83 = arith.select %81, %82, %79 : vector<32x128xi1>, vector<32x128xf32>
    %84 = tpu.concatenate %77, %71, %83 in 1 : vector<32x128xf32>, vector<32x128xf32>, vector<32x128xf32> -> vector<32x384xf32>
    %85 = arith.truncf %84 : vector<32x384xf32> to vector<32x384xbf16>
    %c2 = arith.constant 2 : index
    %c0_27 = arith.constant 0 : index
    %c0_28 = arith.constant 0 : index
    %86 = vector.load %arg2[%c2, %c0_27, %c0_28] : memref<6x384x128xbf16, #tpu.memory_space<vmem>>, vector<1x384x128xbf16>
    %87 = vector.shape_cast %86 : vector<1x384x128xbf16> to vector<384x128xbf16>
    %cst_29 = arith.constant dense<0.000000e+00> : vector<32x128xf32>
    %88 = tpu.matmul %85, %87, %cst_29 {dimension_numbers = #tpu.dot_dimension_numbers<[1], [0], [0], [1], [0, 0, 1, 1], [], []>} : vector<32x384xbf16>, vector<384x128xbf16>, vector<32x128xf32> -> vector<32x128xf32>
    %c2_30 = arith.constant 2 : index
    %c0_31 = arith.constant 0 : index
    %c0_32 = arith.constant 0 : index
    %89 = vector.load %arg3[%c2_30, %c0_31, %c0_32] : memref<6x1x128xf32, #tpu.memory_space<vmem>>, vector<1x1x128xf32>
    %90 = vector.shape_cast %89 : vector<1x1x128xf32> to vector<1x128xf32>
    %91 = vector.broadcast %90 : vector<1x128xf32> to vector<32x128xf32>
    %92 = arith.addf %88, %91 : vector<32x128xf32>
    %cst_33 = arith.constant 0.000000e+00 : f32
    %93 = vector.broadcast %cst_33 : f32 to vector<32x128xf32>
    %94 = arith.maximumf %92, %93 : vector<32x128xf32>
    %95 = vector.extract_strided_slice %94 {offsets = [0, 0], sizes = [31, 128], strides = [1, 1]} : vector<32x128xf32> to vector<31x128xf32>
    %96 = tpu.concatenate %22, %95 in 0 : vector<1x128xf32>, vector<31x128xf32> -> vector<32x128xf32>
    %cst_34 = arith.constant 0.000000e+00 : f32
    %97 = vector.shape_cast %19 : vector<32x1xi1> to vector<32x1xi1>
    %98 = vector.broadcast %97 : vector<32x1xi1> to vector<32x128xi1>
    %99 = vector.broadcast %cst_34 : f32 to vector<32x128xf32>
    %100 = arith.select %98, %99, %96 : vector<32x128xi1>, vector<32x128xf32>
    %101 = vector.extract_strided_slice %94 {offsets = [1, 0], sizes = [31, 128], strides = [1, 1]} : vector<32x128xf32> to vector<31x128xf32>
    %102 = tpu.concatenate %101, %22 in 0 : vector<31x128xf32>, vector<1x128xf32> -> vector<32x128xf32>
    %cst_35 = arith.constant 0.000000e+00 : f32
    %103 = vector.shape_cast %21 : vector<32x1xi1> to vector<32x1xi1>
    %104 = vector.broadcast %103 : vector<32x1xi1> to vector<32x128xi1>
    %105 = vector.broadcast %cst_35 : f32 to vector<32x128xf32>
    %106 = arith.select %104, %105, %102 : vector<32x128xi1>, vector<32x128xf32>
    %107 = tpu.concatenate %100, %94, %106 in 1 : vector<32x128xf32>, vector<32x128xf32>, vector<32x128xf32> -> vector<32x384xf32>
    %108 = arith.truncf %107 : vector<32x384xf32> to vector<32x384xbf16>
    %c3 = arith.constant 3 : index
    %c0_36 = arith.constant 0 : index
    %c0_37 = arith.constant 0 : index
    %109 = vector.load %arg2[%c3, %c0_36, %c0_37] : memref<6x384x128xbf16, #tpu.memory_space<vmem>>, vector<1x384x128xbf16>
    %110 = vector.shape_cast %109 : vector<1x384x128xbf16> to vector<384x128xbf16>
    %cst_38 = arith.constant dense<0.000000e+00> : vector<32x128xf32>
    %111 = tpu.matmul %108, %110, %cst_38 {dimension_numbers = #tpu.dot_dimension_numbers<[1], [0], [0], [1], [0, 0, 1, 1], [], []>} : vector<32x384xbf16>, vector<384x128xbf16>, vector<32x128xf32> -> vector<32x128xf32>
    %c3_39 = arith.constant 3 : index
    %c0_40 = arith.constant 0 : index
    %c0_41 = arith.constant 0 : index
    %112 = vector.load %arg3[%c3_39, %c0_40, %c0_41] : memref<6x1x128xf32, #tpu.memory_space<vmem>>, vector<1x1x128xf32>
    %113 = vector.shape_cast %112 : vector<1x1x128xf32> to vector<1x128xf32>
    %114 = vector.broadcast %113 : vector<1x128xf32> to vector<32x128xf32>
    %115 = arith.addf %111, %114 : vector<32x128xf32>
    %cst_42 = arith.constant 5.000000e-01 : f32
    %116 = vector.broadcast %cst_42 : f32 to vector<32x128xf32>
    %117 = arith.mulf %116, %71 : vector<32x128xf32>
    %118 = arith.addf %115, %117 : vector<32x128xf32>
    %cst_43 = arith.constant 0.000000e+00 : f32
    %119 = vector.broadcast %cst_43 : f32 to vector<32x128xf32>
    %120 = arith.maximumf %118, %119 : vector<32x128xf32>
    %121 = vector.extract_strided_slice %120 {offsets = [0, 0], sizes = [31, 128], strides = [1, 1]} : vector<32x128xf32> to vector<31x128xf32>
    %122 = tpu.concatenate %22, %121 in 0 : vector<1x128xf32>, vector<31x128xf32> -> vector<32x128xf32>
    %cst_44 = arith.constant 0.000000e+00 : f32
    %123 = vector.shape_cast %19 : vector<32x1xi1> to vector<32x1xi1>
    %124 = vector.broadcast %123 : vector<32x1xi1> to vector<32x128xi1>
    %125 = vector.broadcast %cst_44 : f32 to vector<32x128xf32>
    %126 = arith.select %124, %125, %122 : vector<32x128xi1>, vector<32x128xf32>
    %127 = vector.extract_strided_slice %120 {offsets = [1, 0], sizes = [31, 128], strides = [1, 1]} : vector<32x128xf32> to vector<31x128xf32>
    %128 = tpu.concatenate %127, %22 in 0 : vector<31x128xf32>, vector<1x128xf32> -> vector<32x128xf32>
    %cst_45 = arith.constant 0.000000e+00 : f32
    %129 = vector.shape_cast %21 : vector<32x1xi1> to vector<32x1xi1>
    %130 = vector.broadcast %129 : vector<32x1xi1> to vector<32x128xi1>
    %131 = vector.broadcast %cst_45 : f32 to vector<32x128xf32>
    %132 = arith.select %130, %131, %128 : vector<32x128xi1>, vector<32x128xf32>
    %133 = tpu.concatenate %126, %120, %132 in 1 : vector<32x128xf32>, vector<32x128xf32>, vector<32x128xf32> -> vector<32x384xf32>
    %134 = arith.truncf %133 : vector<32x384xf32> to vector<32x384xbf16>
    %c4 = arith.constant 4 : index
    %c0_46 = arith.constant 0 : index
    %c0_47 = arith.constant 0 : index
    %135 = vector.load %arg2[%c4, %c0_46, %c0_47] : memref<6x384x128xbf16, #tpu.memory_space<vmem>>, vector<1x384x128xbf16>
    %136 = vector.shape_cast %135 : vector<1x384x128xbf16> to vector<384x128xbf16>
    %cst_48 = arith.constant dense<0.000000e+00> : vector<32x128xf32>
    %137 = tpu.matmul %134, %136, %cst_48 {dimension_numbers = #tpu.dot_dimension_numbers<[1], [0], [0], [1], [0, 0, 1, 1], [], []>} : vector<32x384xbf16>, vector<384x128xbf16>, vector<32x128xf32> -> vector<32x128xf32>
    %c4_49 = arith.constant 4 : index
    %c0_50 = arith.constant 0 : index
    %c0_51 = arith.constant 0 : index
    %138 = vector.load %arg3[%c4_49, %c0_50, %c0_51] : memref<6x1x128xf32, #tpu.memory_space<vmem>>, vector<1x1x128xf32>
    %139 = vector.shape_cast %138 : vector<1x1x128xf32> to vector<1x128xf32>
    %140 = vector.broadcast %139 : vector<1x128xf32> to vector<32x128xf32>
    %141 = arith.addf %137, %140 : vector<32x128xf32>
    %cst_52 = arith.constant 0.000000e+00 : f32
    %142 = vector.broadcast %cst_52 : f32 to vector<32x128xf32>
    %143 = arith.maximumf %141, %142 : vector<32x128xf32>
    %144 = vector.extract_strided_slice %143 {offsets = [0, 0], sizes = [31, 128], strides = [1, 1]} : vector<32x128xf32> to vector<31x128xf32>
    %145 = tpu.concatenate %22, %144 in 0 : vector<1x128xf32>, vector<31x128xf32> -> vector<32x128xf32>
    %cst_53 = arith.constant 0.000000e+00 : f32
    %146 = vector.shape_cast %19 : vector<32x1xi1> to vector<32x1xi1>
    %147 = vector.broadcast %146 : vector<32x1xi1> to vector<32x128xi1>
    %148 = vector.broadcast %cst_53 : f32 to vector<32x128xf32>
    %149 = arith.select %147, %148, %145 : vector<32x128xi1>, vector<32x128xf32>
    %150 = vector.extract_strided_slice %143 {offsets = [1, 0], sizes = [31, 128], strides = [1, 1]} : vector<32x128xf32> to vector<31x128xf32>
    %151 = tpu.concatenate %150, %22 in 0 : vector<31x128xf32>, vector<1x128xf32> -> vector<32x128xf32>
    %cst_54 = arith.constant 0.000000e+00 : f32
    %152 = vector.shape_cast %21 : vector<32x1xi1> to vector<32x1xi1>
    %153 = vector.broadcast %152 : vector<32x1xi1> to vector<32x128xi1>
    %154 = vector.broadcast %cst_54 : f32 to vector<32x128xf32>
    %155 = arith.select %153, %154, %151 : vector<32x128xi1>, vector<32x128xf32>
    %156 = tpu.concatenate %149, %143, %155 in 1 : vector<32x128xf32>, vector<32x128xf32>, vector<32x128xf32> -> vector<32x384xf32>
    %157 = arith.truncf %156 : vector<32x384xf32> to vector<32x384xbf16>
    %c5 = arith.constant 5 : index
    %c0_55 = arith.constant 0 : index
    %c0_56 = arith.constant 0 : index
    %158 = vector.load %arg2[%c5, %c0_55, %c0_56] : memref<6x384x128xbf16, #tpu.memory_space<vmem>>, vector<1x384x128xbf16>
    %159 = vector.shape_cast %158 : vector<1x384x128xbf16> to vector<384x128xbf16>
    %cst_57 = arith.constant dense<0.000000e+00> : vector<32x128xf32>
    %160 = tpu.matmul %157, %159, %cst_57 {dimension_numbers = #tpu.dot_dimension_numbers<[1], [0], [0], [1], [0, 0, 1, 1], [], []>} : vector<32x384xbf16>, vector<384x128xbf16>, vector<32x128xf32> -> vector<32x128xf32>
    %c5_58 = arith.constant 5 : index
    %c0_59 = arith.constant 0 : index
    %c0_60 = arith.constant 0 : index
    %161 = vector.load %arg3[%c5_58, %c0_59, %c0_60] : memref<6x1x128xf32, #tpu.memory_space<vmem>>, vector<1x1x128xf32>
    %162 = vector.shape_cast %161 : vector<1x1x128xf32> to vector<1x128xf32>
    %163 = vector.broadcast %162 : vector<1x128xf32> to vector<32x128xf32>
    %164 = arith.addf %160, %163 : vector<32x128xf32>
    %cst_61 = arith.constant 5.000000e-01 : f32
    %165 = vector.broadcast %cst_61 : f32 to vector<32x128xf32>
    %166 = arith.mulf %165, %120 : vector<32x128xf32>
    %167 = arith.addf %164, %166 : vector<32x128xf32>
    %cst_62 = arith.constant 0.000000e+00 : f32
    %168 = vector.broadcast %cst_62 : f32 to vector<32x128xf32>
    %169 = arith.maximumf %167, %168 : vector<32x128xf32>
    %cst_63 = arith.constant 1.000000e-01 : f32
    %170 = vector.broadcast %cst_63 : f32 to vector<32x128xf32>
    %171 = arith.mulf %170, %169 : vector<32x128xf32>
    %172 = arith.addf %0, %171 : vector<32x128xf32>
    %cst_64 = arith.constant 0.000000e+00 : f32
    %173 = vector.broadcast %cst_64 : f32 to vector<32x128xf32>
    %174 = arith.maximumf %172, %173 : vector<32x128xf32>
    %c0_65 = arith.constant 0 : index
    %c0_66 = arith.constant 0 : index
    %175 = vector.load %arg4[%c0_65, %c0_66] : memref<32x128xf32, #tpu.memory_space<vmem>>, vector<32x128xf32>
    tpu.vector_store %arg4[%c0_65, %c0_66], %174 {strides = array<i32>} : memref<32x128xf32, #tpu.memory_space<vmem>>, vector<32x128xf32>,
    return
  }
  func.func @transform_0(%arg0: i32) -> (i32, i32) {
    %c0_i32 = arith.constant 0 : i32
    %c0_i32_0 = arith.constant 0 : i32
    %c0_i32_1 = arith.constant 0 : i32
    return %c0_i32, %c0_i32_0 : i32, i32
  }
  func.func @transform_1(%arg0: i32) -> (i32, i32, i32) {
    %c0_i32 = arith.constant 0 : i32
    %c0_i32_0 = arith.constant 0 : i32
    %c0_i32_1 = arith.constant 0 : i32
    %c0_i32_2 = arith.constant 0 : i32
    return %c0_i32, %c0_i32_0, %c0_i32_1 : i32, i32, i32
  }
  func.func @transform_2(%arg0: i32) -> (i32, i32, i32) {
    %c0_i32 = arith.constant 0 : i32
    %c0_i32_0 = arith.constant 0 : i32
    %c0_i32_1 = arith.constant 0 : i32
    %c0_i32_2 = arith.constant 0 : i32
    return %c0_i32, %c0_i32_0, %c0_i32_1 : i32, i32, i32
  }
  func.func @transform_3(%arg0: i32) -> (i32, i32) {
    %c0_i32 = arith.constant 0 : i32
    %c0_i32_0 = arith.constant 0 : i32
    %c0_i32_1 = arith.constant 0 : i32
    return %c0_i32, %c0_i32_0 : i32, i32
  }
}

</mosaic_0001>

<bundles_post_ra>
// kernel: tpu_custom_call.1
= control target key start
LH: loop header
LB: loop body
LE: loop exit
PB: predicated region body
PF: predicated region fallthrough
CT: control target
= control target key end

     0   :  { %8 = vsyncpa [#allocation3], 0  ;;  %s3394_s0 = inlined_call_operand.hbm [shape: f32[32,128], index: 0, kind: input, shape index: {}]   ;;  %s3395_s1 = inlined_call_operand.hbm [shape: bf16[6,384,128], index: 1, kind: input, shape index: {}]   ;;  %s3396_s2 = inlined_call_operand.vmem [shape: f32[6,1,128], index: 2, kind: input, shape index: {}]   ;;  %s3397_s3 = inlined_call_operand.hbm [shape: f32[32,128], index: 3, kind: output, shape index: {}]  }
   0x1   :  { %9 = vsyncpa [#allocation6], 0 }
   0x2   :  { %10 = vsyncpa [#allocation4], 0  ;;  %s3084_s12 = smov [#allocation2]   ;;  %s3012_s16 = scalar_lea.hbm %s3394_s0, 512 }
   0x3   :  { %s16_s13 = sshll.u32 %s3084_s12, 4  ;;  %p3013_p0 = scmp.ne.s32.totalorder %s3394_s0, %s3012_s16  ;;  %s17_s13 = int_to_ptr.vmem [resolvable:$true] %s16_s13 }
   0x4   :  { %p3016_p1 = scmp.lt.u32.totalorder %s3012_s16, %s3394_s0 }
   0x6   :  { %p3018_p2 = pnand %p3016_p1, %p3013_p0 }
   0x8   :  { %3021 = shalt.err (!%p3018_p2)
}
   0x9   :  { %s3022_s21 = scalar_lea.vmem %s17_s13, 512  ;;  %p3027_p4 = scmp.lt.s32.totalorder %s17_s13, %s17_s13 }
   0xa   :  { %p3023_p3 = scmp.ne.s32.totalorder %s17_s13, %s3022_s21  ;;  %p3028_p5 = scmp.lt.s32.totalorder %s3022_s21, %s3022_s21 }
   0xc   :  { %p3029_p6 = por %p3028_p5, %p3027_p4 }
   0xe   :  { %p3030_p7 = pnand %p3029_p6, %p3023_p3 }
  0x10   :  { %3033 = shalt.err (!%p3030_p7)
}
  0x11   :  { %s3085_s22 = smov 128   ;;  %s3086_s23 = smov 8  }
  0x12   :  { %22 = dma.hbm_to_vmem [thread:$0]  %s3394_s0, 512, %s17_s13, [#allocation3], %s3085_s22, %s3085_s22, %s3086_s23  }
  0x13   :  { %s3087_s26 = smov [#allocation5]   ;;  %s3034_s30 = scalar_lea.hbm %s3395_s1, 18432 }
  0x14   :  { %s28_s27 = sshll.u32 %s3087_s26, 4  ;;  %p3035_p8 = scmp.ne.s32.totalorder %s3395_s1, %s3034_s30  ;;  %s29_s27 = int_to_ptr.vmem [resolvable:$true] %s28_s27 }
  0x15   :  { %p3038_p9 = scmp.lt.u32.totalorder %s3034_s30, %s3395_s1 }
  0x17   :  { %p3040_p10 = pnand %p3038_p9, %p3035_p8 }
  0x19   :  { %3043 = shalt.err (!%p3040_p10)
}
  0x1a   :  { %s3044_s8 = scalar_lea.vmem %s29_s27, 18432  ;;  %p3049_p12 = scmp.lt.s32.totalorder %s29_s27, %s29_s27 }
  0x1b   :  { %p3045_p11 = scmp.ne.s32.totalorder %s29_s27, %s3044_s8  ;;  %p3050_p13 = scmp.lt.s32.totalorder %s3044_s8, %s3044_s8 }
  0x1d   :  { %p3051_p0 = por %p3050_p13, %p3049_p12 }
  0x1f   :  { %p3052_p1 = pnand %p3051_p0, %p3045_p11 }
  0x21   :  { %3055 = shalt.err (!%p3052_p1)
}
  0x22   :  { %s3088_s0 = smov 64   ;;  %s3089_s9 = smov 4  }
  0x23   :  { %34 = dma.hbm_to_vmem [thread:$0]  %s3395_s1, 18432, %s29_s27, [#allocation6], %s3088_s0, %s3088_s0, %s3089_s9  }
  0x24   :  { %3078 = dma.done.wait [#allocation3], 512  }
  0x25   :  { %3079 = vsyncadd [#allocation3], 4294966784 }
  0x26   :  { %3080 = dma.done.wait [#allocation6], 18432  }
  0x27   :  { %3081 = vsyncadd [#allocation6], 4294948864  ;;  %v2864_v0 = vld [vmem:[#allocation5 + $0x40] sm:$0xff]   ;;  %v2867_v3 = vld [vmem:[#allocation5 + $0x48] sm:$0xff]   ;;  %v48_v8 = vlaneseq  ;;  %vm113_vm0 = vcmask 1040384   ;;  %vm138_vm1 = vcmask 1046528  }
  0x28   :  { %v2865_v1 = vld [vmem:[#allocation5] sm:$0xff]   ;;  %2508 = vmatprep.subr.bf16.mxu0 %v2864_v0  ;;  %v2868_v4 = vld [vmem:[#allocation5 + $0x8] sm:$0xff]   ;;  %v2870_v6 = vld [vmem:[#allocation5 + $0x50] sm:$0xff]   ;;  %vm3090_vm5 = vmmov 1  }
  0x29   :  { %v2866_v2 = vld [vmem:[#allocation5 + $0x80] sm:$0xff]   ;;  %2509 = vmatpush3.bf16.msra.mxu0 %v2865_v1  ;;  %v2869_v5 = vld [vmem:[#allocation5 + $0x88] sm:$0xff]   ;;  %v2871_v7 = vld [vmem:[#allocation5 + $0x10] sm:$0xff]   ;;  %v49_v13 = vshrl.u32 %v48_v8, 7 }
  0x2a   :  { %2736 = vmatprep.subr.bf16.mxu1 %v2866_v2  ;;  %2510 = vmatprep.subr.bf16.mxu0 %v2867_v3  ;;  %v2872_v9 = vld [vmem:[#allocation5 + $0x90] sm:$0xff]   ;;  %v2873_v10 = vld [vmem:[#allocation5 + $0x58] sm:$0xff]   ;;  %v2876_v14 = vld [vmem:[#allocation5 + $0x60] sm:$0xff]  }
  0x2b   :  { %2737 = vmatpush3.bf16.msra.mxu1 %v2866_v2  ;;  %v2874_v11 = vld [vmem:[#allocation5 + $0x18] sm:$0xff]   ;;  %v2878_v15 = vld [vmem:[#allocation5 + $0xa0] sm:$0xff]   ;;  %v50_v17 = vadd.s32 8, %v49_v13  ;;  %v2879_v18 = vld [vmem:[#allocation5 + $0x68] sm:$0xff]   ;;  %v52_v19 = vadd.s32 24, %v49_v13  ;;  %v57_v20 = vand.u32 15, %v49_v13 }
  0x2c   :  { %2738 = vmatprep.subr.bf16.mxu1 %v2869_v5  ;;  %v2875_v12 = vld [vmem:[#allocation5 + $0x98] sm:$0xff]   ;;  %v2877_v16 = vld [vmem:[#allocation5 + $0x20] sm:$0xff]   ;;  %v2881_v21 = vld [vmem:[#allocation5 + $0xa8] sm:$0xff]   ;;  %v51_v22 = vadd.s32 16, %v49_v13 }
  0x2d   :  { %2511 = vmatpush3.bf16.msra.mxu0 %v2868_v4  ;;  %v2880_v23 = vld [vmem:[#allocation5 + $0x28] sm:$0xff]   ;;  %v64_v24 = vand.u32 15, %v50_v17  ;;  %v2882_v25 = vld [vmem:[#allocation5 + $0x70] sm:$0xff]   ;;  %v78_v26 = vand.u32 15, %v52_v19  ;;  %vm3139_vm2 = vcmp.ne.s32.totalorder %v57_v20, 0  ;;  %v2885_v30 = vld [vmem:[#allocation5 + $0x78] sm:$0xff]  }
  0x2e   :  { %2512 = vmatprep.subr.bf16.mxu0 %v2870_v6  ;;  %v2884_v27 = vld [vmem:[#allocation5 + $0xb0] sm:$0xff]   ;;  %v3143_v31 = vld [vmem:[#allocation2] sm:$0xff]  ;;  %v3145_v32 = vld [vmem:[#allocation2 + $0x8] sm:$0xff]  ;;  %v71_v35 = vand.u32 15, %v51_v22 }
  0x2f   :  { %2739 = vmatpush3.bf16.msra.mxu1 %v2869_v5  ;;  %v2883_v28 = vld [vmem:[#allocation5 + $0x30] sm:$0xff]   ;;  %vm3147_vm3 = vcmp.ne.s32.totalorder %v64_v24, 15  ;;  %vm3151_vm4 = vcmp.ne.s32.totalorder %v78_v26, 15  ;;  %v2886_v36 = vld [vmem:[#allocation5 + $0x38] sm:$0xff]   ;;  %v115_v37 = vrot.slane %v3145_v32, 7  ;;  %v164_v38 = vpack.c.bf16 %v3145_v32, %v3143_v31  ;;  %vm3167_vm6 = vmpackc.low %vm3090_vm5, %vm3139_vm2 }
  0x30   :  { %2740 = vmatprep.subr.bf16.mxu1 %v2872_v9  ;;  %v114_v39 = vrot.slane %v3143_v31, 7  ;;  %v3159_v40 = vld [vmem:[#allocation2 + $0x10] sm:$0xff]  ;;  %v139_v41 = vrot.slane %v3143_v31, 1  ;;  %v3162_v42 = vld [vmem:[#allocation2 + $0x18] sm:$0xff]  ;;  %v140_v45 = vrot.slane %v3145_v32, 1  ;;  %vm3179_vm7 = vmpackc.low %vm3147_vm3, %vm3090_vm5  ;;  %vm2505_vm9 = vcmp.ne.s32.totalorder %v71_v35, 0 }
  0x31   :  { %2513 = vmatpush3.bf16.msra.mxu0 %v2871_v7  ;;  %v2887_v43 = vld [vmem:[#allocation5 + $0xb8] sm:$0xff]   ;;  %v142_v46 = vrot.slane %v3159_v40, 1  ;;  %v144_v47 = vrot.slane %v3162_v42, 1  ;;  %400 = vmatprep.mubr.bf16.mxu0 %v164_v38  ;;  %v2888_v51 = vld [vmem:[#allocation5 + $0x100] sm:$0xff]   ;;  %vm3190_vm8 = vmpackc.low %vm3151_vm4, %vm3090_vm5  ;;  %v117_v59 = vrot.slane %v3159_v40, 7  ;;  %v167_v61 = vpack.c.bf16 %v3162_v42, %v3159_v40 }
  0x32   :  { %2514 = vmatprep.subr.bf16.mxu0 %v2873_v10  ;;  %v116_v48 = vsel %vm113_vm0, %v114_v39, %v115_v37  ;;  %v125_v49 = vsel %vm113_vm0, 0.0, %v114_v39  ;;  %v141_v52 = vsel %vm138_vm1, %v139_v41, %v140_v45  ;;  %v2889_v60 = vld [vmem:[#allocation5 + $0xc0] sm:$0xff]   ;;  %v119_v62 = vrot.slane %v3162_v42, 7  ;;  %v2890_v63 = vld [vmem:[#allocation5 + $0x108] sm:$0xff]   ;;  %vm3201_vm10 = vmpackc.low %vm3090_vm5, %vm2505_vm9 }
  0x33   :  { %2741 = vmatpush3.bf16.msra.mxu1 %v2872_v9  ;;  %v143_v53 = vsel %vm138_vm1, %v140_v45, %v142_v46  ;;  %v145_v55 = vsel %vm138_vm1, %v142_v46, %v144_v47  ;;  %v150_v56 = vsel %vm138_vm1, %v144_v47, 0.0  ;;  %v2280_v58 = vpack.c.bf16 %v116_v48, %v125_v49  ;;  %v2893_v1 = vld [vmem:[#allocation5 + $0x140] sm:$0xff]   ;;  %v2891_v3 = vld [vmem:[#allocation5 + $0xc8] sm:$0xff]   ;;  %v2892_v7 = vld [vmem:[#allocation5 + $0x110] sm:$0xff]  }
  0x34   :  { %2742 = vmatprep.subr.bf16.mxu1 %v2875_v12  ;;  %v2288_v54 = vpack.c.bf16 %v143_v53, %v141_v52  ;;  %v2292_v0 = vpack.c.bf16 %v150_v56, %v145_v55  ;;  %v118_v4 = vsel %vm113_vm0, %v115_v37, %v117_v59  ;;  %v120_v5 = vsel %vm113_vm0, %v117_v59, %v119_v62  ;;  %v2896_v6 = vld [vmem:[#allocation5 + $0x148] sm:$0xff]   ;;  %v2894_v8 = vld [vmem:[#allocation5 + $0xd0] sm:$0xff]   ;;  %v2895_v10 = vld [vmem:[#allocation5 + $0x118] sm:$0xff]  }
  0x35   :  { %2515 = vmatpush3.bf16.msra.mxu0 %v2874_v11  ;;  %v2284_v9 = vpack.c.bf16 %v120_v5, %v118_v4  ;;  %v2897_v11 = vld [vmem:[#allocation5 + $0xd8] sm:$0xff]   ;;  %v2899_v13 = vld [vmem:[#allocation5 + $0x150] sm:$0xff]   ;;  %v2903_v17 = vld [vmem:[#allocation5 + $0xe8] sm:$0xff]  }
  0x36   :  { %2516 = vmatprep.subr.bf16.mxu0 %v2876_v14  ;;  %2752 = vmatprep.mubr.msk.bf16.mxu1 %vm3179_vm7, %v2288_v54  ;;  %v2900_v14 = vld [vmem:[#allocation5 + $0xe0] sm:$0xff]   ;;  %v2906_v20 = vld [vmem:[#allocation5 + $0xf0] sm:$0xff]   ;;  %v2908_v22 = vld [vmem:[#allocation5 + $0x168] sm:$0xff]  }
  0x37   :  { %2743 = vmatpush3.bf16.msra.mxu1 %v2875_v12  ;;  %v2898_v12 = vld [vmem:[#allocation5 + $0x120] sm:$0xff]   ;;  %v2910_v24 = vld [vmem:[#allocation5 + $0x170] sm:$0xff]  }
  0x38   :  { %2744 = vmatprep.subr.bf16.mxu1 %v2878_v15  ;;  %v2905_v19 = vld [vmem:[#allocation5 + $0x160] sm:$0xff]  }
  0x39   :  { %2517 = vmatpush3.bf16.msra.mxu0 %v2877_v16  ;;  %v2902_v16 = vld [vmem:[#allocation5 + $0x158] sm:$0xff]   ;;  %v2912_v26 = vld [vmem:[#allocation5 + $0x1c0] sm:$0xff]  }
  0x3a   :  { %2518 = vmatprep.subr.bf16.mxu0 %v2879_v18  ;;  %v2904_v18 = vld [vmem:[#allocation5 + $0x130] sm:$0xff]   ;;  %v2913_v5 = vld [vmem:[#allocation5 + $0x180] sm:$0xff]  }
  0x3b   :  { %2745 = vmatpush3.bf16.msra.mxu1 %v2878_v15  ;;  %v2901_v15 = vld [vmem:[#allocation5 + $0x128] sm:$0xff]   ;;  %v2463_v50 = vld [vmem:[%s3396_s2 + $0x5] ss:$0 sm:$0xff] }
  0x3c   :  { %2746 = vmatprep.subr.bf16.mxu1 %v2881_v21 }
  0x3d   :  { %2519 = vmatpush3.bf16.msra.mxu0 %v2880_v23  ;;  %v2909_v23 = vld [vmem:[#allocation5 + $0xf8] sm:$0xff]  }
  0x3e   :  { %2520 = vmatprep.subr.bf16.mxu0 %v2882_v25  ;;  %v2911_v25 = vld [vmem:[#allocation5 + $0x178] sm:$0xff]  }
  0x3f   :  { %2747 = vmatpush3.bf16.msra.mxu1 %v2881_v21  ;;  %v2907_v21 = vld [vmem:[#allocation5 + $0x138] sm:$0xff]  }
  0x40   :  { %2748 = vmatprep.subr.bf16.mxu1 %v2884_v27 }
  0x41   :  { %2521 = vmatpush3.bf16.msra.mxu0 %v2883_v28 }
  0x42   :  { %2522 = vmatprep.subr.bf16.mxu0 %v2885_v30  ;;  %v2253_v30 = vld [vmem:[%s3396_s2] ss:$0 sm:$0xff] }
  0x43   :  { %2749 = vmatpush3.bf16.msra.mxu1 %v2884_v27  ;;  %v3213_v27 = vld [vmem:[#allocation5 + $0x200] sm:$0xff]  }
  0x44   :  { %2750 = vmatprep.subr.bf16.mxu1 %v2887_v43 }
  0x45   :  { %2523 = vmatpush3.bf16.msra.mxu0 %v2886_v36 }
  0x46   :  { %2546 = vmatprep.subr.bf16.mxu0 %v2888_v51 }
  0x47   :  { %2751 = vmatpush3.bf16.msra.mxu1 %v2887_v43 }
  0x48   :  { %2281 = vmatmul.mubr.msk.bf16.vlgmr.msra.gmra.mrb[0].mxu0 %vm3167_vm6, %v2280_v58  ;;  %2756 = vmatprep.subr.bf16.mxu1 %v2893_v1 }
  0x49   :  { %408 = vmatprep.mubr.bf16.mxu0 %v167_v61  ;;  %2547 = vmatpush3.bf16.msra.mxu0 %v2889_v60 }
  0x4a   :  { %2753 = vmatmul.mubr.msk.bf16.vlgmr.msra.gmra.mrb[0].mxu1 %vm3190_vm8, %v2292_v0  ;;  %2548 = vmatprep.subr.bf16.mxu0 %v2890_v63 }
  0x4b   :  { %2757 = vmatpush3.bf16.msra.mxu1 %v2893_v1 }
  0x4c   :  { %2758 = vmatprep.subr.bf16.mxu1 %v2896_v6 }
  0x4d   :  { %2549 = vmatpush3.bf16.msra.mxu0 %v2891_v3 }
  0x4e   :  { %2550 = vmatprep.subr.bf16.mxu0 %v2892_v7 }
  0x4f   :  { %2759 = vmatpush3.bf16.msra.mxu1 %v2896_v6 }
  0x50   :  { %2285 = vmatmul.mubr.msk.bf16.gmra.mrb[4].mxu0 %vm3201_vm10, %v2284_v9  ;;  %2760 = vmatprep.subr.bf16.mxu1 %v2899_v13 }
  0x51   :  { %2551 = vmatpush3.bf16.msra.mxu0 %v2894_v8  ;;  %v2914_v8 = vld [vmem:[#allocation5 + $0x1c8] sm:$0xff]  }
  0x52   :  { %2552 = vmatprep.subr.bf16.mxu0 %v2895_v10 }
  0x53   :  { %2761 = vmatpush3.bf16.msra.mxu1 %v2899_v13  ;;  %v2916_v13 = vld [vmem:[#allocation5 + $0x188] sm:$0xff]  }
  0x54   :  { %2762 = vmatprep.subr.bf16.mxu1 %v2902_v16 }
  0x55   :  { %2553 = vmatpush3.bf16.msra.mxu0 %v2897_v11 }
  0x56   :  { %2554 = vmatprep.subr.bf16.mxu0 %v2898_v12 }
  0x57   :  { %2763 = vmatpush3.bf16.msra.mxu1 %v2902_v16 }
  0x58   :  { %2764 = vmatprep.subr.bf16.mxu1 %v2905_v19 }
  0x59   :  { %2555 = vmatpush3.bf16.msra.mxu0 %v2900_v14 }
  0x5a   :  { %2556 = vmatprep.subr.bf16.mxu0 %v2901_v15 }
  0x5b   :  { %2765 = vmatpush3.bf16.msra.mxu1 %v2905_v19 }
  0x5c   :  { %2766 = vmatprep.subr.bf16.mxu1 %v2908_v22 }
  0x5d   :  { %2557 = vmatpush3.bf16.msra.mxu0 %v2903_v17  ;;  %v2917_v17 = vld [vmem:[#allocation5 + $0x1d0] sm:$0xff]  }
  0x5e   :  { %2558 = vmatprep.subr.bf16.mxu0 %v2904_v18 }
  0x5f   :  { %2767 = vmatpush3.bf16.msra.mxu1 %v2908_v22 }
  0x60   :  { %2768 = vmatprep.subr.bf16.mxu1 %v2910_v24 }
  0x61   :  { %2559 = vmatpush3.bf16.msra.mxu0 %v2906_v20 }
  0x62   :  { %2560 = vmatprep.subr.bf16.mxu0 %v2907_v21 }
  0x63   :  { %2769 = vmatpush3.bf16.msra.mxu1 %v2910_v24 }
  0x64   :  { %2770 = vmatprep.subr.bf16.mxu1 %v2911_v25 }
  0x65   :  { %2561 = vmatpush3.bf16.msra.mxu0 %v2909_v23 }
  0x66   :  { %2584 = vmatprep.subr.bf16.mxu0 %v2912_v26 }
  0x67   :  { %2771 = vmatpush3.bf16.msra.mxu1 %v2911_v25 }
  0x68   :  { %2776 = vmatprep.subr.bf16.mxu1 %v3213_v27 }
 0x11b   :  { %v2524_v28 = vpop.f32.mrb[0].mxu0 }
 0x11c   :  { %v2525_v29 = vpop.f32.mrb[1].mxu0 }
 0x11d   :  { %v2526_v33 = vadd.f32 %v2525_v29, %v2524_v28  ;;  %v2754_v34 = vpop.f32.mrb[0].mxu1  ;;  %v2527_v35 = vpop.f32.mrb[2].mxu0  ;;  %v2918_v28 = vld [vmem:[#allocation5 + $0x208] sm:$0xff]   ;;  %v2919_v29 = vld [vmem:[#allocation5 + $0x190] sm:$0xff]  }
 0x11e   :  { %v451_v36 = vpop.f32.mrb[1].mxu1  ;;  %v2528_v37 = vpop.f32.mrb[3].mxu0 }
 0x11f   :  { %v403_v38 = vadd.f32 %v2526_v33, %v2253_v30  ;;  %v2529_v39 = vadd.f32 %v2528_v37, %v2527_v35  ;;  %v2755_v41 = vpop.f32.mrb[2].mxu1  ;;  %v2921_v33 = vld [vmem:[#allocation5 + $0x210] sm:$0xff]   ;;  %v2923_v35 = vld [vmem:[#allocation5 + $0x1e0] sm:$0xff]  }
 0x120   :  { %v454_v43 = vpop.f32.mrb[3].mxu1  ;;  %v2925_v37 = vld [vmem:[#allocation5 + $0x1a0] sm:$0xff]  }
 0x121   :  { %v452_v45 = vadd.f32 %v451_v36, %v403_v38  ;;  %v406_v46 = vadd.f32 %v2529_v39, %v2253_v30  ;;  %v2924_v36 = vld [vmem:[#allocation5 + $0x218] sm:$0xff]   ;;  %v2926_v38 = vld [vmem:[#allocation5 + $0x1e8] sm:$0xff]  }
 0x122   :  { %v2928_v39 = vld [vmem:[#allocation5 + $0x1a8] sm:$0xff]  }
 0x123   :  { %v466_v47 = vmax.f32 %v452_v45, 0.0  ;;  %v455_v48 = vadd.f32 %v454_v43, %v406_v46  ;;  %v2530_v49 = vpop.f32.mrb[4].mxu0  ;;  %v2930_v43 = vld [vmem:[#allocation5 + $0x228] sm:$0xff]   ;;  %v2931_v45 = vld [vmem:[#allocation5 + $0x1b0] sm:$0xff]   ;;  %v2932_v46 = vld [vmem:[#allocation5 + $0x1f8] sm:$0xff]  }
 0x124   :  { %v2531_v51 = vpop.f32.mrb[5].mxu0 }
 0x125   :  { %v474_v52 = vrot.slane %v466_v47, 7  ;;  %v467_v53 = vmax.f32 %v455_v48, 0.0  ;;  %v2532_v54 = vadd.f32 %v2531_v51, %v2530_v49  ;;  %v2533_v55 = vpop.f32.mrb[6].mxu0  ;;  %v490_v58 = vrot.slane %v466_v47, 1  ;;  %v2934_v48 = vld [vmem:[#allocation5 + $0x1b8] sm:$0xff]   ;;  %v2936_v51 = vld [vmem:[#allocation5 + $0x280] sm:$0xff]  }
 0x126   :  { %v2534_v56 = vpop.f32.mrb[7].mxu0  ;;  %v2935_v49 = vld [vmem:[#allocation5 + $0x238] sm:$0xff]  }
 0x127   :  { %v475_v59 = vrot.slane %v467_v53, 7  ;;  %v491_v60 = vrot.slane %v467_v53, 1  ;;  %v411_v61 = vadd.f32 %v2532_v54, %v2253_v30  ;;  %v2535_v62 = vadd.f32 %v2534_v56, %v2533_v55 }
 0x128   :  { %v507_v63 = vpack.c.bf16 %v467_v53, %v466_v47  ;;  %v485_v0 = vsel %vm113_vm0, 0.0, %v474_v52  ;;  %v2933_v47 = vld [vmem:[#allocation5 + $0x230] sm:$0xff]  }
 0x129   :  { %v476_v1 = vsel %vm113_vm0, %v474_v52, %v475_v59  ;;  %v460_v3 = vadd.f32 %v2754_v34, %v411_v61  ;;  %v492_v4 = vsel %vm138_vm1, %v490_v58, %v491_v60  ;;  %v414_v7 = vadd.f32 %v2535_v62, %v2253_v30  ;;  %v2920_v30 = vld [vmem:[#allocation5 + $0x1d8] sm:$0xff]   ;;  %v3236_v52 = vld [vmem:[#allocation5 + $0x2c0] sm:$0xff]  }
 0x12a   :  { %v2322_v6 = vpack.c.bf16 %v476_v1, %v485_v0  ;;  %745 = vmatprep.mubr.bf16.mxu0 %v507_v63  ;;  %v2922_v34 = vld [vmem:[#allocation5 + $0x198] sm:$0xff]   ;;  %v811_v0 = vmul.f32 0.5, %v3143_v31 }
 0x12b   :  { %v468_v9 = vmax.f32 %v460_v3, 0.0  ;;  %v463_v10 = vadd.f32 %v2755_v41, %v414_v7  ;;  %v2929_v41 = vld [vmem:[#allocation5 + $0x1f0] sm:$0xff]  }
 0x12c   :  { %2323 = vmatmul.mubr.msk.bf16.vlgmr.msra.gmra.mrb[8].mxu0 %vm3167_vm6, %v2322_v6 }
 0x12d   :  { %v477_v11 = vrot.slane %v468_v9, 7  ;;  %v493_v12 = vrot.slane %v468_v9, 1  ;;  %2585 = vmatpush3.bf16.msra.mxu0 %v2913_v5  ;;  %v469_v14 = vmax.f32 %v463_v10, 0.0  ;;  %v813_v10 = vmul.f32 0.5, %v3159_v40 }
 0x12e   :  { %2586 = vmatprep.subr.bf16.mxu0 %v2914_v8 }
 0x12f   :  { %v494_v15 = vsel %vm138_vm1, %v491_v60, %v493_v12  ;;  %v478_v16 = vsel %vm113_vm0, %v475_v59, %v477_v11  ;;  %v479_v18 = vrot.slane %v469_v14, 7  ;;  %v495_v19 = vrot.slane %v469_v14, 1  ;;  %v2295_v60 = vld [vmem:[%s3396_s2 + $0x1] ss:$0 sm:$0xff] }
 0x130   :  { %v510_v20 = vpack.c.bf16 %v469_v14, %v468_v9  ;;  %v2330_v21 = vpack.c.bf16 %v494_v15, %v492_v4  ;;  %v812_v9 = vmul.f32 0.5, %v3145_v32 }
 0x131   :  { %2587 = vmatpush3.bf16.msra.mxu0 %v2916_v13  ;;  %v501_v22 = vsel %vm138_vm1, %v495_v19, 0.0  ;;  %v480_v23 = vsel %vm113_vm0, %v477_v11, %v479_v18  ;;  %v496_v24 = vsel %vm138_vm1, %v493_v12, %v495_v19 }
 0x132   :  { %753 = vmatprep.mubr.bf16.mxu0 %v510_v20  ;;  %2772 = vmatprep.mubr.msk.bf16.mxu1 %vm3179_vm7, %v2330_v21  ;;  %v2326_v25 = vpack.c.bf16 %v480_v23, %v478_v16  ;;  %v2334_v26 = vpack.c.bf16 %v501_v22, %v496_v24 }
 0x133   :  { %2588 = vmatprep.subr.bf16.mxu0 %v2917_v17  ;;  %v814_v17 = vmul.f32 0.5, %v3162_v42 }
 0x134   :  { %2327 = vmatmul.mubr.msk.bf16.gmra.mrb[12].mxu0 %vm3201_vm10, %v2326_v25  ;;  %2773 = vmatmul.mubr.msk.bf16.vlgmr.msra.gmra.mrb[4].mxu1 %vm3190_vm8, %v2334_v26 }
 0x135   :  { %2777 = vmatpush3.bf16.msra.mxu1 %v3213_v27  ;;  %2589 = vmatpush3.bf16.msra.mxu0 %v2919_v29  ;;  %v2927_v27 = vld [vmem:[#allocation5 + $0x220] sm:$0xff]  }
 0x136   :  { %2778 = vmatprep.subr.bf16.mxu1 %v2918_v28  ;;  %2590 = vmatprep.subr.bf16.mxu0 %v2920_v30 }
 0x139   :  { %2779 = vmatpush3.bf16.msra.mxu1 %v2918_v28  ;;  %2591 = vmatpush3.bf16.msra.mxu0 %v2922_v34 }
 0x13a   :  { %2780 = vmatprep.subr.bf16.mxu1 %v2921_v33  ;;  %2592 = vmatprep.subr.bf16.mxu0 %v2923_v35 }
 0x13d   :  { %2781 = vmatpush3.bf16.msra.mxu1 %v2921_v33  ;;  %2593 = vmatpush3.bf16.msra.mxu0 %v2925_v37 }
 0x13e   :  { %2782 = vmatprep.subr.bf16.mxu1 %v2924_v36  ;;  %2594 = vmatprep.subr.bf16.mxu0 %v2926_v38 }
 0x141   :  { %2783 = vmatpush3.bf16.msra.mxu1 %v2924_v36  ;;  %2595 = vmatpush3.bf16.msra.mxu0 %v2928_v39 }
 0x142   :  { %2784 = vmatprep.subr.bf16.mxu1 %v2927_v27  ;;  %2596 = vmatprep.subr.bf16.mxu0 %v2929_v41  ;;  %v2937_v41 = vld [vmem:[#allocation5 + $0x240] sm:$0xff]  }
 0x145   :  { %2785 = vmatpush3.bf16.msra.mxu1 %v2927_v27  ;;  %2597 = vmatpush3.bf16.msra.mxu0 %v2931_v45 }
 0x146   :  { %2786 = vmatprep.subr.bf16.mxu1 %v2930_v43  ;;  %2598 = vmatprep.subr.bf16.mxu0 %v2932_v46 }
 0x149   :  { %2787 = vmatpush3.bf16.msra.mxu1 %v2930_v43  ;;  %2599 = vmatpush3.bf16.msra.mxu0 %v2934_v48 }
 0x14a   :  { %2788 = vmatprep.subr.bf16.mxu1 %v2933_v47  ;;  %2622 = vmatprep.subr.bf16.mxu0 %v2936_v51 }
 0x14d   :  { %2789 = vmatpush3.bf16.msra.mxu1 %v2933_v47  ;;  %v2938_v47 = vld [vmem:[#allocation5 + $0x288] sm:$0xff]  }
 0x14e   :  { %2790 = vmatprep.subr.bf16.mxu1 %v2935_v49 }
 0x151   :  { %2791 = vmatpush3.bf16.msra.mxu1 %v2935_v49 }
 0x152   :  { %2796 = vmatprep.subr.bf16.mxu1 %v3236_v52 }
 0x1ff   :  { %v2562_v53 = vpop.f32.mrb[8].mxu0 }
 0x200   :  { %v2563_v54 = vpop.f32.mrb[9].mxu0 }
 0x201   :  { %v2564_v55 = vadd.f32 %v2563_v54, %v2562_v53  ;;  %v2565_v56 = vpop.f32.mrb[10].mxu0  ;;  %v2944_v54 = vld [vmem:[#allocation5 + $0x2c8] sm:$0xff]  }
 0x202   :  { %v2566_v58 = vpop.f32.mrb[11].mxu0 }
 0x203   :  { %v2567_v59 = vadd.f32 %v2566_v58, %v2565_v56  ;;  %v748_v63 = vadd.f32 %v2564_v55, %v2295_v60  ;;  %v2939_v56 = vld [vmem:[#allocation5 + $0x248] sm:$0xff]   ;;  %v2940_v58 = vld [vmem:[#allocation5 + $0x290] sm:$0xff]  }
 0x205   :  { %v751_v8 = vadd.f32 %v2567_v59, %v2295_v60  ;;  %v2942_v59 = vld [vmem:[#allocation5 + $0x250] sm:$0xff]  }
 0x207   :  { %v2568_v61 = vpop.f32.mrb[12].mxu0  ;;  %v2774_v62 = vpop.f32.mrb[4].mxu1 }
 0x208   :  { %v2569_v1 = vpop.f32.mrb[13].mxu0  ;;  %v796_v3 = vpop.f32.mrb[5].mxu1 }
 0x209   :  { %v2570_v4 = vadd.f32 %v2569_v1, %v2568_v61  ;;  %v797_v5 = vadd.f32 %v796_v3, %v748_v63  ;;  %v2571_v6 = vpop.f32.mrb[14].mxu0  ;;  %v2775_v7 = vpop.f32.mrb[6].mxu1  ;;  %v2945_v61 = vld [vmem:[#allocation5 + $0x258] sm:$0xff]   ;;  %v2947_v63 = vld [vmem:[#allocation5 + $0x2d0] sm:$0xff]   ;;  %v2951_v3 = vld [vmem:[#allocation5 + $0x268] sm:$0xff]  }
 0x20a   :  { %v2572_v11 = vpop.f32.mrb[15].mxu0  ;;  %v799_v12 = vpop.f32.mrb[7].mxu1  ;;  %v2950_v1 = vld [vmem:[#allocation5 + $0x2d8] sm:$0xff]  }
 0x20b   :  { %v756_v13 = vadd.f32 %v2570_v4, %v2295_v60  ;;  %v815_v14 = vadd.f32 %v811_v0, %v797_v5  ;;  %v2573_v15 = vadd.f32 %v2572_v11, %v2571_v6  ;;  %v800_v16 = vadd.f32 %v799_v12, %v751_v8  ;;  %v2948_v0 = vld [vmem:[#allocation5 + $0x260] sm:$0xff]   ;;  %v2952_v4 = vld [vmem:[#allocation5 + $0x2b0] sm:$0xff]   ;;  %v2956_v8 = vld [vmem:[#allocation5 + $0x2e8] sm:$0xff]  }
 0x20c   :  { %v2953_v5 = vld [vmem:[#allocation5 + $0x2e0] sm:$0xff]   ;;  %v2954_v6 = vld [vmem:[#allocation5 + $0x270] sm:$0xff]   ;;  %v2959_v11 = vld [vmem:[#allocation5 + $0x2f8] sm:$0xff]  }
 0x20d   :  { %v805_v31 = vadd.f32 %v2774_v62, %v756_v13  ;;  %v3246_v18 = vmax.f32 %v815_v14, 0.0  ;;  %v759_v19 = vadd.f32 %v2573_v15, %v2295_v60  ;;  %v816_v20 = vadd.f32 %v812_v9, %v800_v16  ;;  %v2943_v60 = vld [vmem:[#allocation5 + $0x298] sm:$0xff]   ;;  %v2946_v62 = vld [vmem:[#allocation5 + $0x2a0] sm:$0xff]  }
 0x20e   :  { %v2957_v9 = vld [vmem:[#allocation5 + $0x278] sm:$0xff]   ;;  %v2960_v12 = vld [vmem:[#allocation5 + $0x340] sm:$0xff]  }
 0x20f   :  { %v817_v21 = vadd.f32 %v813_v10, %v805_v31  ;;  %v808_v22 = vadd.f32 %v2775_v7, %v759_v19  ;;  %v827_v23 = vrot.slane %v3246_v18, 7  ;;  %v3249_v32 = vmax.f32 %v816_v20, 0.0  ;;  %v2955_v7 = vld [vmem:[#allocation5 + $0x2b8] sm:$0xff]   ;;  %v2958_v10 = vld [vmem:[#allocation5 + $0x2f0] sm:$0xff]   ;;  %v3283_v13 = vld [vmem:[#allocation5 + $0x380] sm:$0xff]  }
 0x210   :  { %v843_v25 = vrot.slane %v3246_v18, 1  ;;  %v2337_v16 = vld [vmem:[%s3396_s2 + $0x2] ss:$0 sm:$0xff] }
 0x211   :  { %v3251_v40 = vmax.f32 %v817_v21, 0.0  ;;  %v818_v24 = vadd.f32 %v814_v17, %v808_v22  ;;  %v828_v26 = vrot.slane %v3249_v32, 7  ;;  %v844_v42 = vrot.slane %v3249_v32, 1 }
 0x212   :  { %v860_v28 = vpack.c.bf16 %v3249_v32, %v3246_v18  ;;  %v838_v34 = vsel %vm113_vm0, 0.0, %v827_v23 }
 0x213   :  { %v3258_v29 = vmax.f32 %v818_v24, 0.0  ;;  %v846_v30 = vrot.slane %v3251_v40, 1  ;;  %v830_v33 = vrot.slane %v3251_v40, 7  ;;  %v829_v35 = vsel %vm113_vm0, %v827_v23, %v828_v26 }
 0x214   :  { %1098 = vmatprep.mubr.bf16.mxu0 %v860_v28  ;;  %v845_v36 = vsel %vm138_vm1, %v843_v25, %v844_v42  ;;  %v2364_v37 = vpack.c.bf16 %v829_v35, %v838_v34 }
 0x215   :  { %v863_v38 = vpack.c.bf16 %v3258_v29, %v3251_v40  ;;  %v847_v27 = vsel %vm138_vm1, %v844_v42, %v846_v30  ;;  %v848_v39 = vrot.slane %v3258_v29, 1  ;;  %v831_v45 = vsel %vm113_vm0, %v828_v26, %v830_v33 }
 0x216   :  { %v2372_v43 = vpack.c.bf16 %v847_v27, %v845_v36  ;;  %v832_v46 = vrot.slane %v3258_v29, 7  ;;  %2365 = vmatmul.mubr.msk.bf16.vlgmr.msra.gmra.mrb[16].mxu0 %vm3167_vm6, %v2364_v37 }
 0x217   :  { %v849_v48 = vsel %vm138_vm1, %v846_v30, %v848_v39  ;;  %v854_v49 = vsel %vm138_vm1, %v848_v39, 0.0  ;;  %1106 = vmatprep.mubr.bf16.mxu0 %v863_v38  ;;  %2623 = vmatpush3.bf16.msra.mxu0 %v2937_v41 }
 0x218   :  { %2792 = vmatprep.mubr.msk.bf16.mxu1 %vm3179_vm7, %v2372_v43  ;;  %v2376_v51 = vpack.c.bf16 %v854_v49, %v849_v48  ;;  %v833_v53 = vsel %vm113_vm0, %v830_v33, %v832_v46  ;;  %2624 = vmatprep.subr.bf16.mxu0 %v2938_v47 }
 0x219   :  { %v2368_v55 = vpack.c.bf16 %v833_v53, %v831_v45 }
 0x21a   :  { %2793 = vmatmul.mubr.msk.bf16.vlgmr.msra.gmra.mrb[8].mxu1 %vm3190_vm8, %v2376_v51 }
 0x21b   :  { %2797 = vmatpush3.bf16.msra.mxu1 %v3236_v52  ;;  %2625 = vmatpush3.bf16.msra.mxu0 %v2939_v56  ;;  %v2949_v52 = vld [vmem:[#allocation5 + $0x2a8] sm:$0xff]  }
 0x21c   :  { %2798 = vmatprep.subr.bf16.mxu1 %v2944_v54  ;;  %2626 = vmatprep.subr.bf16.mxu0 %v2940_v58  ;;  %v2962_v58 = vld [vmem:[#allocation5 + $0x348] sm:$0xff]  }
 0x21e   :  { %2369 = vmatmul.mubr.msk.bf16.gmra.mrb[20].mxu0 %vm3201_vm10, %v2368_v55 }
 0x21f   :  { %2799 = vmatpush3.bf16.msra.mxu1 %v2944_v54  ;;  %2627 = vmatpush3.bf16.msra.mxu0 %v2942_v59  ;;  %v2961_v54 = vld [vmem:[#allocation5 + $0x300] sm:$0xff]  }
 0x220   :  { %2628 = vmatprep.subr.bf16.mxu0 %v2943_v60  ;;  %2800 = vmatprep.subr.bf16.mxu1 %v2947_v63 }
 0x223   :  { %2629 = vmatpush3.bf16.msra.mxu0 %v2945_v61  ;;  %2801 = vmatpush3.bf16.msra.mxu1 %v2947_v63  ;;  %v2964_v63 = vld [vmem:[#allocation5 + $0x308] sm:$0xff]  }
 0x224   :  { %2630 = vmatprep.subr.bf16.mxu0 %v2946_v62  ;;  %2802 = vmatprep.subr.bf16.mxu1 %v2950_v1 }
 0x227   :  { %2631 = vmatpush3.bf16.msra.mxu0 %v2948_v0  ;;  %2803 = vmatpush3.bf16.msra.mxu1 %v2950_v1 }
 0x228   :  { %2632 = vmatprep.subr.bf16.mxu0 %v2949_v52  ;;  %2804 = vmatprep.subr.bf16.mxu1 %v2953_v5 }
 0x22b   :  { %2633 = vmatpush3.bf16.msra.mxu0 %v2951_v3  ;;  %2805 = vmatpush3.bf16.msra.mxu1 %v2953_v5  ;;  %v2965_v3 = vld [vmem:[#allocation5 + $0x350] sm:$0xff]  }
 0x22c   :  { %2634 = vmatprep.subr.bf16.mxu0 %v2952_v4  ;;  %2806 = vmatprep.subr.bf16.mxu1 %v2956_v8 }
 0x22f   :  { %2635 = vmatpush3.bf16.msra.mxu0 %v2954_v6  ;;  %2807 = vmatpush3.bf16.msra.mxu1 %v2956_v8 }
 0x230   :  { %2636 = vmatprep.subr.bf16.mxu0 %v2955_v7  ;;  %2808 = vmatprep.subr.bf16.mxu1 %v2958_v10 }
 0x233   :  { %2637 = vmatpush3.bf16.msra.mxu0 %v2957_v9  ;;  %2809 = vmatpush3.bf16.msra.mxu1 %v2958_v10 }
 0x234   :  { %2810 = vmatprep.subr.bf16.mxu1 %v2959_v11  ;;  %2660 = vmatprep.subr.bf16.mxu0 %v2960_v12 }
 0x237   :  { %2811 = vmatpush3.bf16.msra.mxu1 %v2959_v11 }
 0x238   :  { %2816 = vmatprep.subr.bf16.mxu1 %v3283_v13 }
 0x2e9   :  { %v2600_v14 = vpop.f32.mrb[16].mxu0 }
 0x2ea   :  { %v2601_v15 = vpop.f32.mrb[17].mxu0 }
 0x2eb   :  { %v2602_v17 = vadd.f32 %v2601_v15, %v2600_v14  ;;  %v2603_v31 = vpop.f32.mrb[18].mxu0  ;;  %v2966_v14 = vld [vmem:[#allocation5 + $0x388] sm:$0xff]   ;;  %v2967_v15 = vld [vmem:[#allocation5 + $0x310] sm:$0xff]  }
 0x2ec   :  { %v2604_v19 = vpop.f32.mrb[19].mxu0 }
 0x2ed   :  { %v2794_v20 = vpop.f32.mrb[8].mxu1  ;;  %v2605_v21 = vadd.f32 %v2604_v19, %v2603_v31  ;;  %v1101_v22 = vadd.f32 %v2602_v17, %v2337_v16  ;;  %v2969_v17 = vld [vmem:[#allocation5 + $0x390] sm:$0xff]   ;;  %v2970_v31 = vld [vmem:[#allocation5 + $0x318] sm:$0xff]   ;;  %v2971_v19 = vld [vmem:[#allocation5 + $0x360] sm:$0xff]  }
 0x2ee   :  { %v1149_v23 = vpop.f32.mrb[9].mxu1 }
 0x2ef   :  { %v2795_v24 = vpop.f32.mrb[10].mxu1  ;;  %v1150_v25 = vadd.f32 %v1149_v23, %v1101_v22  ;;  %v1104_v26 = vadd.f32 %v2605_v21, %v2337_v16  ;;  %v2973_v21 = vld [vmem:[#allocation5 + $0x320] sm:$0xff]   ;;  %v2974_v22 = vld [vmem:[#allocation5 + $0x368] sm:$0xff]  }
 0x2f0   :  { %v1152_v42 = vpop.f32.mrb[11].mxu1  ;;  %v2976_v23 = vld [vmem:[#allocation5 + $0x328] sm:$0xff]  }
 0x2f1   :  { %v1164_v28 = vmax.f32 %v1150_v25, 0.0  ;;  %v1153_v30 = vadd.f32 %v1152_v42, %v1104_v26  ;;  %v2606_v33 = vpop.f32.mrb[20].mxu0  ;;  %v2978_v25 = vld [vmem:[#allocation5 + $0x3a8] sm:$0xff]   ;;  %v2979_v26 = vld [vmem:[#allocation5 + $0x330] sm:$0xff]   ;;  %v2980_v42 = vld [vmem:[#allocation5 + $0x378] sm:$0xff]  }
 0x2f2   :  { %v2607_v34 = vpop.f32.mrb[21].mxu0 }
 0x2f3   :  { %v1172_v35 = vrot.slane %v1164_v28, 7  ;;  %v1165_v36 = vmax.f32 %v1153_v30, 0.0  ;;  %v2608_v37 = vadd.f32 %v2607_v34, %v2606_v33  ;;  %v2609_v38 = vpop.f32.mrb[22].mxu0  ;;  %v1188_v39 = vrot.slane %v1164_v28, 1  ;;  %v2982_v30 = vld [vmem:[#allocation5 + $0x338] sm:$0xff]   ;;  %v2984_v34 = vld [vmem:[#allocation5 + $0x400] sm:$0xff]  }
 0x2f4   :  { %v2610_v27 = vpop.f32.mrb[23].mxu0  ;;  %v2983_v33 = vld [vmem:[#allocation5 + $0x3b8] sm:$0xff]  }
 0x2f5   :  { %v1173_v41 = vrot.slane %v1165_v36, 7  ;;  %v1189_v43 = vrot.slane %v1165_v36, 1  ;;  %v1109_v45 = vadd.f32 %v2608_v37, %v2337_v16  ;;  %v2611_v46 = vadd.f32 %v2610_v27, %v2609_v38 }
 0x2f6   :  { %v1205_v47 = vpack.c.bf16 %v1165_v36, %v1164_v28  ;;  %v1183_v48 = vsel %vm113_vm0, 0.0, %v1172_v35  ;;  %v2981_v28 = vld [vmem:[#allocation5 + $0x3b0] sm:$0xff]  }
 0x2f7   :  { %v1174_v49 = vsel %vm113_vm0, %v1172_v35, %v1173_v41  ;;  %v1158_v51 = vadd.f32 %v2794_v20, %v1109_v45  ;;  %v1190_v53 = vsel %vm138_vm1, %v1188_v39, %v1189_v43  ;;  %v1112_v56 = vadd.f32 %v2611_v46, %v2337_v16  ;;  %v2968_v16 = vld [vmem:[#allocation5 + $0x358] sm:$0xff]   ;;  %v3306_v35 = vld [vmem:[#allocation5 + $0x440] sm:$0xff]  }
 0x2f8   :  { %v2406_v55 = vpack.c.bf16 %v1174_v49, %v1183_v48  ;;  %1443 = vmatprep.mubr.bf16.mxu0 %v1205_v47  ;;  %v2972_v20 = vld [vmem:[#allocation5 + $0x398] sm:$0xff]  }
 0x2f9   :  { %v1166_v59 = vmax.f32 %v1158_v51, 0.0  ;;  %v1161_v60 = vadd.f32 %v2795_v24, %v1112_v56  ;;  %v2977_v24 = vld [vmem:[#allocation5 + $0x370] sm:$0xff]  }
 0x2fa   :  { %2407 = vmatmul.mubr.msk.bf16.vlgmr.msra.gmra.mrb[24].mxu0 %vm3167_vm6, %v2406_v55 }
 0x2fb   :  { %v1175_v61 = vrot.slane %v1166_v59, 7  ;;  %v1191_v62 = vrot.slane %v1166_v59, 1  ;;  %2661 = vmatpush3.bf16.msra.mxu0 %v2961_v54  ;;  %v1167_v0 = vmax.f32 %v1161_v60, 0.0  ;;  %v1509_v54 = vmul.f32 0.5, %v3246_v18 }
 0x2fc   :  { %2662 = vmatprep.subr.bf16.mxu0 %v2962_v58 }
 0x2fd   :  { %v1192_v52 = vsel %vm138_vm1, %v1189_v43, %v1191_v62  ;;  %v1176_v1 = vsel %vm113_vm0, %v1173_v41, %v1175_v61  ;;  %v1177_v4 = vrot.slane %v1167_v0, 7  ;;  %v1193_v5 = vrot.slane %v1167_v0, 1  ;;  %v2379_v43 = vld [vmem:[%s3396_s2 + $0x3] ss:$0 sm:$0xff] }
 0x2fe   :  { %v1208_v6 = vpack.c.bf16 %v1167_v0, %v1166_v59  ;;  %v2414_v7 = vpack.c.bf16 %v1192_v52, %v1190_v53 }
 0x2ff   :  { %2663 = vmatpush3.bf16.msra.mxu0 %v2964_v63  ;;  %v1199_v8 = vsel %vm138_vm1, %v1193_v5, 0.0  ;;  %v1178_v9 = vsel %vm113_vm0, %v1175_v61, %v1177_v4  ;;  %v1194_v10 = vsel %vm138_vm1, %v1191_v62, %v1193_v5  ;;  %v1510_v61 = vmul.f32 0.5, %v3249_v32 }
 0x300   :  { %1451 = vmatprep.mubr.bf16.mxu0 %v1208_v6  ;;  %2812 = vmatprep.mubr.msk.bf16.mxu1 %vm3179_vm7, %v2414_v7  ;;  %v2410_v11 = vpack.c.bf16 %v1178_v9, %v1176_v1  ;;  %v2418_v12 = vpack.c.bf16 %v1199_v8, %v1194_v10  ;;  %v1511_v1 = vmul.f32 0.5, %v3251_v40  ;;  %v1512_v8 = vmul.f32 0.5, %v3258_v29 }
 0x301   :  { %2664 = vmatprep.subr.bf16.mxu0 %v2965_v3 }
 0x302   :  { %2411 = vmatmul.mubr.msk.bf16.gmra.mrb[28].mxu0 %vm3201_vm10, %v2410_v11  ;;  %2813 = vmatmul.mubr.msk.bf16.vlgmr.msra.gmra.mrb[12].mxu1 %vm3190_vm8, %v2418_v12 }
 0x303   :  { %2817 = vmatpush3.bf16.msra.mxu1 %v3283_v13  ;;  %2665 = vmatpush3.bf16.msra.mxu0 %v2967_v15  ;;  %v2975_v13 = vld [vmem:[#allocation5 + $0x3a0] sm:$0xff]  }
 0x304   :  { %2818 = vmatprep.subr.bf16.mxu1 %v2966_v14  ;;  %2666 = vmatprep.subr.bf16.mxu0 %v2968_v16 }
 0x307   :  { %2819 = vmatpush3.bf16.msra.mxu1 %v2966_v14  ;;  %2667 = vmatpush3.bf16.msra.mxu0 %v2970_v31 }
 0x308   :  { %2820 = vmatprep.subr.bf16.mxu1 %v2969_v17  ;;  %2668 = vmatprep.subr.bf16.mxu0 %v2971_v19 }
 0x30b   :  { %2821 = vmatpush3.bf16.msra.mxu1 %v2969_v17  ;;  %2669 = vmatpush3.bf16.msra.mxu0 %v2973_v21 }
 0x30c   :  { %2822 = vmatprep.subr.bf16.mxu1 %v2972_v20  ;;  %2670 = vmatprep.subr.bf16.mxu0 %v2974_v22 }
 0x30f   :  { %2823 = vmatpush3.bf16.msra.mxu1 %v2972_v20  ;;  %2671 = vmatpush3.bf16.msra.mxu0 %v2976_v23 }
 0x310   :  { %2824 = vmatprep.subr.bf16.mxu1 %v2975_v13  ;;  %2672 = vmatprep.subr.bf16.mxu0 %v2977_v24  ;;  %v2985_v24 = vld [vmem:[#allocation5 + $0x3c0] sm:$0xff]  }
 0x313   :  { %2825 = vmatpush3.bf16.msra.mxu1 %v2975_v13  ;;  %2673 = vmatpush3.bf16.msra.mxu0 %v2979_v26 }
 0x314   :  { %2826 = vmatprep.subr.bf16.mxu1 %v2978_v25  ;;  %2674 = vmatprep.subr.bf16.mxu0 %v2980_v42 }
 0x317   :  { %2827 = vmatpush3.bf16.msra.mxu1 %v2978_v25  ;;  %2675 = vmatpush3.bf16.msra.mxu0 %v2982_v30 }
 0x318   :  { %2828 = vmatprep.subr.bf16.mxu1 %v2981_v28  ;;  %2698 = vmatprep.subr.bf16.mxu0 %v2984_v34 }
 0x31b   :  { %2829 = vmatpush3.bf16.msra.mxu1 %v2981_v28  ;;  %v2986_v28 = vld [vmem:[#allocation5 + $0x408] sm:$0xff]  }
 0x31c   :  { %2830 = vmatprep.subr.bf16.mxu1 %v2983_v33 }
 0x31f   :  { %2831 = vmatpush3.bf16.msra.mxu1 %v2983_v33 }
 0x320   :  { %2836 = vmatprep.subr.bf16.mxu1 %v3306_v35 }
 0x3cd   :  { %v2638_v36 = vpop.f32.mrb[24].mxu0 }
 0x3ce   :  { %v2639_v37 = vpop.f32.mrb[25].mxu0 }
 0x3cf   :  { %v2640_v38 = vadd.f32 %v2639_v37, %v2638_v36  ;;  %v2641_v27 = vpop.f32.mrb[26].mxu0  ;;  %v2992_v37 = vld [vmem:[#allocation5 + $0x448] sm:$0xff]  }
 0x3d0   :  { %v2642_v39 = vpop.f32.mrb[27].mxu0 }
 0x3d1   :  { %v2643_v41 = vadd.f32 %v2642_v39, %v2641_v27  ;;  %v1446_v47 = vadd.f32 %v2640_v38, %v2379_v43  ;;  %v2987_v27 = vld [vmem:[#allocation5 + $0x3c8] sm:$0xff]   ;;  %v2988_v39 = vld [vmem:[#allocation5 + $0x410] sm:$0xff]  }
 0x3d3   :  { %v1449_v58 = vadd.f32 %v2643_v41, %v2379_v43  ;;  %v2990_v41 = vld [vmem:[#allocation5 + $0x3d0] sm:$0xff]  }
 0x3d5   :  { %v2644_v45 = vpop.f32.mrb[28].mxu0  ;;  %v2814_v46 = vpop.f32.mrb[12].mxu1 }
 0x3d6   :  { %v2645_v48 = vpop.f32.mrb[29].mxu0  ;;  %v1494_v49 = vpop.f32.mrb[13].mxu1 }
 0x3d7   :  { %v2646_v51 = vadd.f32 %v2645_v48, %v2644_v45  ;;  %v1495_v53 = vadd.f32 %v1494_v49, %v1446_v47  ;;  %v2647_v55 = vpop.f32.mrb[30].mxu0  ;;  %v2815_v56 = vpop.f32.mrb[14].mxu1  ;;  %v2993_v45 = vld [vmem:[#allocation5 + $0x3d8] sm:$0xff]   ;;  %v2995_v47 = vld [vmem:[#allocation5 + $0x450] sm:$0xff]   ;;  %v2996_v48 = vld [vmem:[#allocation5 + $0x3e0] sm:$0xff]  }
 0x3d8   :  { %v2648_v59 = vpop.f32.mrb[31].mxu0  ;;  %v1497_v60 = vpop.f32.mrb[15].mxu1  ;;  %v2998_v49 = vld [vmem:[#allocation5 + $0x458] sm:$0xff]  }
 0x3d9   :  { %v1454_v62 = vadd.f32 %v2646_v51, %v2379_v43  ;;  %v1513_v63 = vadd.f32 %v1509_v54, %v1495_v53  ;;  %v2649_v0 = vadd.f32 %v2648_v59, %v2647_v55  ;;  %v1498_v52 = vadd.f32 %v1497_v60, %v1449_v58  ;;  %v2999_v51 = vld [vmem:[#allocation5 + $0x3e8] sm:$0xff]   ;;  %v3000_v53 = vld [vmem:[#allocation5 + $0x430] sm:$0xff]   ;;  %v3001_v54 = vld [vmem:[#allocation5 + $0x460] sm:$0xff]  }
 0x3da   :  { %v3002_v55 = vld [vmem:[#allocation5 + $0x3f0] sm:$0xff]   ;;  %v3004_v58 = vld [vmem:[#allocation5 + $0x468] sm:$0xff]   ;;  %v3005_v59 = vld [vmem:[#allocation5 + $0x3f8] sm:$0xff]  }
 0x3db   :  { %v1503_v3 = vadd.f32 %v2814_v46, %v1454_v62  ;;  %v3315_v4 = vmax.f32 %v1513_v63, 0.0  ;;  %v1457_v5 = vadd.f32 %v2649_v0, %v2379_v43  ;;  %v1514_v6 = vadd.f32 %v1510_v61, %v1498_v52  ;;  %v2991_v43 = vld [vmem:[#allocation5 + $0x418] sm:$0xff]   ;;  %v2994_v46 = vld [vmem:[#allocation5 + $0x420] sm:$0xff]   ;;  %v3006_v60 = vld [vmem:[#allocation5 + $0x470] sm:$0xff]  }
 0x3dc   :  { %v3007_v61 = vld [vmem:[#allocation5 + $0x478] sm:$0xff]   ;;  %v2421_v0 = vld [vmem:[%s3396_s2 + $0x4] ss:$0 sm:$0xff]  ;;  %s3091_s2 = smov [#allocation7]  }
 0x3dd   :  { %v1515_v7 = vadd.f32 %v1511_v1, %v1503_v3  ;;  %v1506_v18 = vadd.f32 %v2815_v56, %v1457_v5  ;;  %v1525_v9 = vrot.slane %v3315_v4, 7  ;;  %v3319_v10 = vmax.f32 %v1514_v6, 0.0  ;;  %v3003_v56 = vld [vmem:[#allocation5 + $0x438] sm:$0xff]   ;;  %s2240_s25 = sshll.u32 %s3091_s2, 4  ;;  %s2241_s25 = int_to_ptr.vmem [resolvable:$true] %s2240_s25 }
 0x3de   :  { %v1541_v12 = vrot.slane %v3315_v4, 1  ;;  %v2207_v57 = vmul.f32 0.5, %v3315_v4  ;;  %s3056_s26 = scalar_lea.vmem %s2241_s25, 512  ;;  %p3061_p3 = scmp.lt.s32.totalorder %s2241_s25, %s2241_s25 }
 0x3df   :  { %v3321_v32 = vmax.f32 %v1515_v7, 0.0  ;;  %v1516_v11 = vadd.f32 %v1512_v8, %v1506_v18  ;;  %v1526_v40 = vrot.slane %v3319_v10, 7  ;;  %v1542_v14 = vrot.slane %v3319_v10, 1  ;;  %p3057_p2 = scmp.ne.s32.totalorder %s2241_s25, %s3056_s26  ;;  %p3062_p4 = scmp.lt.s32.totalorder %s3056_s26, %s3056_s26 }
 0x3e0   :  { %v1558_v15 = vpack.c.bf16 %v3319_v10, %v3315_v4  ;;  %v1536_v31 = vsel %vm113_vm0, 0.0, %v1525_v9 }
 0x3e1   :  { %v3328_v16 = vmax.f32 %v1516_v11, 0.0  ;;  %v1544_v29 = vrot.slane %v3321_v32, 1  ;;  %v1528_v17 = vrot.slane %v3321_v32, 7  ;;  %v1527_v19 = vsel %vm113_vm0, %v1525_v9, %v1526_v40  ;;  %p3063_p5 = por %p3062_p4, %p3061_p3 }
 0x3e2   :  { %1796 = vmatprep.mubr.bf16.mxu0 %v1558_v15  ;;  %v1543_v20 = vsel %vm138_vm1, %v1541_v12, %v1542_v14  ;;  %v2448_v21 = vpack.c.bf16 %v1527_v19, %v1536_v31 }
 0x3e3   :  { %v1561_v22 = vpack.c.bf16 %v3328_v16, %v3321_v32  ;;  %v1545_v13 = vsel %vm138_vm1, %v1542_v14, %v1544_v29  ;;  %v1546_v23 = vrot.slane %v3328_v16, 1  ;;  %v1529_v26 = vsel %vm113_vm0, %v1526_v40, %v1528_v17  ;;  %p3064_p6 = pnand %p3063_p5, %p3057_p2 }
 0x3e4   :  { %v2456_v25 = vpack.c.bf16 %v1545_v13, %v1543_v20  ;;  %v1530_v42 = vrot.slane %v3328_v16, 7  ;;  %2449 = vmatmul.mubr.msk.bf16.vlgmr.msra.gmra.mrb[32].mxu0 %vm3167_vm6, %v2448_v21 }
 0x3e5   :  { %v1547_v30 = vsel %vm138_vm1, %v1544_v29, %v1546_v23  ;;  %v1552_v33 = vsel %vm138_vm1, %v1546_v23, 0.0  ;;  %1804 = vmatprep.mubr.bf16.mxu0 %v1561_v22  ;;  %2699 = vmatpush3.bf16.msra.mxu0 %v2985_v24 }
 0x3e6   :  { %2832 = vmatprep.mubr.msk.bf16.mxu1 %vm3179_vm7, %v2456_v25  ;;  %v2460_v34 = vpack.c.bf16 %v1552_v33, %v1547_v30  ;;  %v1531_v36 = vsel %vm113_vm0, %v1528_v17, %v1530_v42  ;;  %2700 = vmatprep.subr.bf16.mxu0 %v2986_v28 }
 0x3e7   :  { %v2452_v38 = vpack.c.bf16 %v1531_v36, %v1529_v26 }
 0x3e8   :  { %2833 = vmatmul.mubr.msk.bf16.vlgmr.msra.gmra.mrb[16].mxu1 %vm3190_vm8, %v2460_v34 }
 0x3e9   :  { %2837 = vmatpush3.bf16.msra.mxu1 %v3306_v35  ;;  %2701 = vmatpush3.bf16.msra.mxu0 %v2987_v27  ;;  %v2997_v35 = vld [vmem:[#allocation5 + $0x428] sm:$0xff]  }
 0x3ea   :  { %2838 = vmatprep.subr.bf16.mxu1 %v2992_v37  ;;  %2702 = vmatprep.subr.bf16.mxu0 %v2988_v39 }
 0x3ec   :  { %2453 = vmatmul.mubr.msk.bf16.gmra.mrb[36].mxu0 %vm3201_vm10, %v2452_v38 }
 0x3ed   :  { %2839 = vmatpush3.bf16.msra.mxu1 %v2992_v37  ;;  %2703 = vmatpush3.bf16.msra.mxu0 %v2990_v41 }
 0x3ee   :  { %2704 = vmatprep.subr.bf16.mxu0 %v2991_v43  ;;  %2840 = vmatprep.subr.bf16.mxu1 %v2995_v47 }
 0x3f1   :  { %2705 = vmatpush3.bf16.msra.mxu0 %v2993_v45  ;;  %2841 = vmatpush3.bf16.msra.mxu1 %v2995_v47 }
 0x3f2   :  { %2706 = vmatprep.subr.bf16.mxu0 %v2994_v46  ;;  %2842 = vmatprep.subr.bf16.mxu1 %v2998_v49 }
 0x3f5   :  { %2707 = vmatpush3.bf16.msra.mxu0 %v2996_v48  ;;  %2843 = vmatpush3.bf16.msra.mxu1 %v2998_v49 }
 0x3f6   :  { %2708 = vmatprep.subr.bf16.mxu0 %v2997_v35  ;;  %2844 = vmatprep.subr.bf16.mxu1 %v3001_v54 }
 0x3f9   :  { %2709 = vmatpush3.bf16.msra.mxu0 %v2999_v51  ;;  %2845 = vmatpush3.bf16.msra.mxu1 %v3001_v54 }
 0x3fa   :  { %2710 = vmatprep.subr.bf16.mxu0 %v3000_v53  ;;  %2846 = vmatprep.subr.bf16.mxu1 %v3004_v58 }
 0x3fd   :  { %2711 = vmatpush3.bf16.msra.mxu0 %v3002_v55  ;;  %2847 = vmatpush3.bf16.msra.mxu1 %v3004_v58 }
 0x3fe   :  { %2712 = vmatprep.subr.bf16.mxu0 %v3003_v56  ;;  %2848 = vmatprep.subr.bf16.mxu1 %v3006_v60 }
 0x401   :  { %2713 = vmatpush3.bf16.msra.mxu0 %v3005_v59  ;;  %2849 = vmatpush3.bf16.msra.mxu1 %v3006_v60 }
 0x402   :  { %2850 = vmatprep.subr.bf16.mxu1 %v3007_v61 }
 0x405   :  { %2851 = vmatpush3.bf16.msra.mxu1 %v3007_v61 }
 0x4b7   :  { %v2676_v62 = vpop.f32.mrb[32].mxu0 }
 0x4b8   :  { %v2677_v63 = vpop.f32.mrb[33].mxu0 }
 0x4b9   :  { %v2678_v52 = vadd.f32 %v2677_v63, %v2676_v62  ;;  %v2679_v1 = vpop.f32.mrb[34].mxu0 }
 0x4ba   :  { %v2680_v3 = vpop.f32.mrb[35].mxu0 }
 0x4bb   :  { %v2834_v5 = vpop.f32.mrb[16].mxu1  ;;  %v2681_v6 = vadd.f32 %v2680_v3, %v2679_v1  ;;  %v1799_v7 = vadd.f32 %v2678_v52, %v2421_v0 }
 0x4bc   :  { %v1847_v18 = vpop.f32.mrb[17].mxu1 }
 0x4bd   :  { %v2835_v8 = vpop.f32.mrb[18].mxu1  ;;  %v1848_v9 = vadd.f32 %v1847_v18, %v1799_v7  ;;  %v1802_v11 = vadd.f32 %v2681_v6, %v2421_v0 }
 0x4be   :  { %v1850_v12 = vpop.f32.mrb[19].mxu1 }
 0x4bf   :  { %v1862_v40 = vmax.f32 %v1848_v9, 0.0  ;;  %v1851_v14 = vadd.f32 %v1850_v12, %v1802_v11  ;;  %v2682_v15 = vpop.f32.mrb[36].mxu0  ;;  %v2208_v9 = vmul.f32 0.5, %v3319_v10 }
 0x4c0   :  { %v2683_v29 = vpop.f32.mrb[37].mxu0 }
 0x4c1   :  { %v1870_v17 = vrot.slane %v1862_v40, 7  ;;  %v1863_v31 = vmax.f32 %v1851_v14, 0.0  ;;  %v2684_v19 = vadd.f32 %v2683_v29, %v2682_v15  ;;  %v2685_v20 = vpop.f32.mrb[38].mxu0  ;;  %v1886_v22 = vrot.slane %v1862_v40, 1 }
 0x4c2   :  { %v2686_v21 = vpop.f32.mrb[39].mxu0  ;;  %v2209_v15 = vmul.f32 0.5, %v3321_v32 }
 0x4c3   :  { %v1871_v13 = vrot.slane %v1863_v31, 7  ;;  %v1887_v23 = vrot.slane %v1863_v31, 1  ;;  %v1807_v24 = vadd.f32 %v2684_v19, %v2421_v0  ;;  %v2687_v25 = vadd.f32 %v2686_v21, %v2685_v20 }
 0x4c4   :  { %v1903_v26 = vpack.c.bf16 %v1863_v31, %v1862_v40  ;;  %v1881_v42 = vsel %vm113_vm0, 0.0, %v1870_v17  ;;  %v2210_v20 = vmul.f32 0.5, %v3328_v16 }
 0x4c5   :  { %v1872_v28 = vsel %vm113_vm0, %v1870_v17, %v1871_v13  ;;  %v1856_v30 = vadd.f32 %v2834_v5, %v1807_v24  ;;  %v1888_v33 = vsel %vm138_vm1, %v1886_v22, %v1887_v23  ;;  %v1810_v36 = vadd.f32 %v2687_v25, %v2421_v0  ;;  %v3008_v24 = vld [vmem:[#allocation2] sm:$0xff] }
 0x4c6   :  { %v2490_v34 = vpack.c.bf16 %v1872_v28, %v1881_v42  ;;  %2141 = vmatprep.mubr.bf16.mxu0 %v1903_v26 }
 0x4c7   :  { %v1864_v37 = vmax.f32 %v1856_v30, 0.0  ;;  %v1859_v38 = vadd.f32 %v2835_v8, %v1810_v36 }
 0x4c8   :  { %2491 = vmatmul.mubr.msk.bf16.vlgmr.msra.gmra.mrb[40].mxu0 %vm3167_vm6, %v2490_v34  ;;  %v3010_v34 = vld [vmem:[#allocation2 + $0x10] sm:$0xff] }
 0x4c9   :  { %v1873_v27 = vrot.slane %v1864_v37, 7  ;;  %v1889_v39 = vrot.slane %v1864_v37, 1  ;;  %v1865_v41 = vmax.f32 %v1859_v38, 0.0 }
 0x4cb   :  { %v1890_v43 = vsel %vm138_vm1, %v1887_v23, %v1889_v39  ;;  %v1874_v45 = vsel %vm113_vm0, %v1871_v13, %v1873_v27  ;;  %v1875_v46 = vrot.slane %v1865_v41, 7  ;;  %v1891_v47 = vrot.slane %v1865_v41, 1 }
 0x4cc   :  { %v1906_v48 = vpack.c.bf16 %v1865_v41, %v1864_v37  ;;  %v2498_v35 = vpack.c.bf16 %v1890_v43, %v1888_v33  ;;  %v3009_v33 = vld [vmem:[#allocation2 + $0x8] sm:$0xff] }
 0x4cd   :  { %v1897_v49 = vsel %vm138_vm1, %v1891_v47, 0.0  ;;  %v1876_v44 = vsel %vm113_vm0, %v1873_v27, %v1875_v46  ;;  %v1892_v51 = vsel %vm138_vm1, %v1889_v39, %v1891_v47  ;;  %v3011_v27 = vld [vmem:[#allocation2 + $0x18] sm:$0xff] }
 0x4ce   :  { %2149 = vmatprep.mubr.bf16.mxu0 %v1906_v48  ;;  %2852 = vmatprep.mubr.msk.bf16.mxu1 %vm3179_vm7, %v2498_v35  ;;  %v2494_v53 = vpack.c.bf16 %v1876_v44, %v1874_v45  ;;  %v2502_v54 = vpack.c.bf16 %v1897_v49, %v1892_v51 }
 0x4d0   :  { %2495 = vmatmul.mubr.msk.bf16.gmra.mrb[44].mxu0 %vm3201_vm10, %v2494_v53  ;;  %2853 = vmatmul.mubr.msk.bf16.vlgmr.msra.gmra.mrb[20].mxu1 %vm3190_vm8, %v2502_v54 }
 0x59b   :  { %v2714_v55 = vpop.f32.mrb[40].mxu0 }
 0x59c   :  { %v2715_v56 = vpop.f32.mrb[41].mxu0 }
 0x59d   :  { %v2716_v58 = vadd.f32 %v2715_v56, %v2714_v55  ;;  %v2717_v59 = vpop.f32.mrb[42].mxu0 }
 0x59e   :  { %v2718_v60 = vpop.f32.mrb[43].mxu0 }
 0x59f   :  { %v2719_v61 = vadd.f32 %v2718_v60, %v2717_v59  ;;  %v2144_v0 = vadd.f32 %v2716_v58, %v2463_v50 }
 0x5a1   :  { %v2147_v7 = vadd.f32 %v2719_v61, %v2463_v50 }
 0x5a3   :  { %v2720_v62 = vpop.f32.mrb[44].mxu0  ;;  %v2854_v63 = vpop.f32.mrb[20].mxu1 }
 0x5a4   :  { %v2721_v52 = vpop.f32.mrb[45].mxu0  ;;  %v2192_v1 = vpop.f32.mrb[21].mxu1 }
 0x5a5   :  { %v2722_v2 = vadd.f32 %v2721_v52, %v2720_v62  ;;  %v2193_v3 = vadd.f32 %v2192_v1, %v2144_v0  ;;  %v2723_v5 = vpop.f32.mrb[46].mxu0  ;;  %v2855_v6 = vpop.f32.mrb[22].mxu1 }
 0x5a6   :  { %v2724_v18 = vpop.f32.mrb[47].mxu0  ;;  %v2195_v8 = vpop.f32.mrb[23].mxu1 }
 0x5a7   :  { %v2152_v11 = vadd.f32 %v2722_v2, %v2463_v50  ;;  %v2211_v12 = vadd.f32 %v2207_v57, %v2193_v3  ;;  %v2725_v40 = vadd.f32 %v2724_v18, %v2723_v5  ;;  %v2196_v14 = vadd.f32 %v2195_v8, %v2147_v7 }
 0x5a9   :  { %v2201_v29 = vadd.f32 %v2854_v63, %v2152_v11  ;;  %v2215_v17 = vmax.f32 %v2211_v12, 0.0  ;;  %v2155_v31 = vadd.f32 %v2725_v40, %v2463_v50  ;;  %v2212_v19 = vadd.f32 %v2208_v9, %v2196_v14 }
 0x5ab   :  { %v2213_v4 = vadd.f32 %v2209_v15, %v2201_v29  ;;  %v2219_v21 = vmul.f32 0.1, %v2215_v17  ;;  %v2204_v22 = vadd.f32 %v2855_v6, %v2155_v31  ;;  %v2216_v13 = vmax.f32 %v2212_v19, 0.0 }
 0x5ad   :  { %v2217_v23 = vmax.f32 %v2213_v4, 0.0  ;;  %v2223_v25 = vadd.f32 %v3008_v24, %v2219_v21  ;;  %v2214_v10 = vadd.f32 %v2210_v20, %v2204_v22  ;;  %v2220_v26 = vmul.f32 0.1, %v2216_v13 }
 0x5af   :  { %v2221_v42 = vmul.f32 0.1, %v2217_v23  ;;  %v2227_v28 = vmax.f32 %v2223_v25, 0.0  ;;  %v2218_v30 = vmax.f32 %v2214_v10, 0.0  ;;  %v2224_v32 = vadd.f32 %v3009_v33, %v2220_v26 }
 0x5b1   :  { %v2225_v36 = vadd.f32 %v3010_v34, %v2221_v42  ;;  %2231 = vst [vmem:[#allocation7] sm:$0xff] %v2227_v28  ;;  %v2222_v37 = vmul.f32 0.1, %v2218_v30  ;;  %v2228_v38 = vmax.f32 %v2224_v32, 0.0 }
 0x5b3   :  { %v2229_v16 = vmax.f32 %v2225_v36, 0.0  ;;  %v2226_v39 = vadd.f32 %v3011_v27, %v2222_v37  ;;  %2232 = vst [vmem:[#allocation7 + $0x8] sm:$0xff] %v2228_v38 }
 0x5b5   :  { %2233 = vst [vmem:[#allocation7 + $0x10] sm:$0xff] %v2229_v16  ;;  %v2230_v41 = vmax.f32 %v2226_v39, 0.0 }
 0x5b7   :  { %2234 = vst [vmem:[#allocation7 + $0x18] sm:$0xff] %v2230_v41 }
 0x5b8   :  { %3067 = shalt.err (!%p3064_p6)
}
 0x5b9   :  { %s3068_s29 = scalar_lea.hbm %s3397_s3, 512 }
 0x5ba   :  { %p3069_p7 = scmp.ne.s32.totalorder %s3397_s3, %s3068_s29  ;;  %p3072_p8 = scmp.lt.u32.totalorder %s3068_s29, %s3397_s3 }
 0x5bc   :  { %p3074_p9 = pnand %p3072_p8, %p3069_p7 }
 0x5be   :  { %3077 = shalt.err (!%p3074_p9)
}
 0x5bf   :  { %2246 = dma.vmem_to_hbm [thread:$0]  %s2241_s25, 512, %s3397_s3, [#allocation4], %s3085_s22, %s3085_s22, %s3086_s23  }
 0x5c0   :  { %3082 = dma.done.wait [#allocation4], 512  }
 0x5c1   :  { %3083 = vsyncadd [#allocation4], 4294966784 }
 0x5c2   :  { %2250 = vsyncpa [#allocation3], 1 }
 0x5c3   :  { %2251 = vsyncpa [#allocation6], 1 }
 0x5c4   :  { %2252 = vsyncpa [#allocation4], 1 }

</bundles_post_ra>
